<compile_context>
chip_gen: v7x
topology: tpu7x:2x2x1
jax: 0.10.0
libtpu: 0.0.40
codegen_flags: <defaults>
</compile_context>

<pallas_src>
import functools

import jax
import jax.numpy as jnp
from jax.experimental import pallas as pl
from jax.experimental.pallas import tpu as pltpu


def _round_up(x, m):
    return ((x + m - 1) // m) * m


def _pad_rows(a, m_pad):
    m = a.shape[-2]
    if m_pad == m:
        return a
    pad = [(0, 0)] * a.ndim
    pad[-2] = (0, m_pad - m)
    return jnp.pad(a, pad)


def _vmem_limit(block_bytes):
    """Scoped-VMEM limit derived from block sizes: ~4x for double-buffered
    pipelining + f32 intermediates, plus headroom; clamped to [16, 48] MiB so
    one number works on v5e (16 MiB scoped default) through v7x (64 MiB phys)."""
    return int(min(max(4 * block_bytes + (4 << 20), 16 << 20), 48 << 20))


# ----------------------------------------------------------------------------
# Kernel 1: plain tiled matmul + bias (+ fused ReLU) -- conv1 (heads concat'd)
# ----------------------------------------------------------------------------
def _matmul_bias_kernel(x_ref, w_ref, b_ref, o_ref, *, relu):
    acc = jnp.dot(x_ref[...], w_ref[...], preferred_element_type=jnp.float32)
    acc = acc + b_ref[...]                       # f32 bias, broadcasts over rows
    if relu:
        acc = jnp.maximum(acc, 0.0)
    o_ref[...] = acc.astype(o_ref.dtype)


def matmul_bias(x, w, b, *, relu, out_dtype):
    """y = [relu](x @ w + b).  x: (M, K) bf16; w: (K, N) bf16; b: (1, N) f32."""
    m_dim, k_dim = x.shape
    n_dim = w.shape[-1]
    tm = min(512, _round_up(m_dim, 16))
    m_pad = _round_up(m_dim, tm)
    x = _pad_rows(x, m_pad)
    blk = (tm * k_dim + k_dim * n_dim) * 2 + n_dim * 4 \
        + tm * n_dim * jnp.dtype(out_dtype).itemsize
    out = pl.pallas_call(
        functools.partial(_matmul_bias_kernel, relu=relu),
        out_shape=jax.ShapeDtypeStruct((m_pad, n_dim), out_dtype),
        grid=(m_pad // tm,),
        in_specs=[
            pl.BlockSpec((tm, k_dim), lambda i: (i, 0)),
            pl.BlockSpec((k_dim, n_dim), lambda i: (0, 0)),
            pl.BlockSpec((1, n_dim), lambda i: (0, 0)),
        ],
        out_specs=pl.BlockSpec((tm, n_dim), lambda i: (i, 0)),
        compiler_params=pltpu.CompilerParams(
            dimension_semantics=("parallel",),
            vmem_limit_bytes=_vmem_limit(blk)),
    )(x, w, b)
    return out[:m_dim, :] if m_pad != m_dim else out


# ----------------------------------------------------------------------------
# Kernel 2: per-head tiled matmul + bias + ReLU -- conv2 (per-head inputs)
# ----------------------------------------------------------------------------
def _headed_matmul_kernel(x_ref, w_ref, b_ref, o_ref, *, relu):
    acc = jnp.dot(x_ref[0], w_ref[0], preferred_element_type=jnp.float32)
    acc = acc + b_ref[0]
    if relu:
        acc = jnp.maximum(acc, 0.0)
    o_ref[0] = acc.astype(o_ref.dtype)


def headed_matmul(x, w, b, *, relu, out_dtype):
    """y[h] = [relu](x[h] @ w[h] + b[h]).

    x: (H, M, K) bf16; w: (H, K, N) bf16; b: (H, 1, N) f32 -> (H, M, N)."""
    num_heads, k_dim, n_dim = w.shape
    _, m_dim, kx = x.shape
    assert kx == k_dim, (kx, k_dim)
    tm = min(512, _round_up(m_dim, 16))
    m_pad = _round_up(m_dim, tm)
    x = _pad_rows(x, m_pad)
    blk = (tm * k_dim + k_dim * n_dim) * 2 + n_dim * 4 \
        + tm * n_dim * jnp.dtype(out_dtype).itemsize
    out = pl.pallas_call(
        functools.partial(_headed_matmul_kernel, relu=relu),
        out_shape=jax.ShapeDtypeStruct((num_heads, m_pad, n_dim), out_dtype),
        grid=(num_heads, m_pad // tm),
        in_specs=[
            pl.BlockSpec((1, tm, k_dim), lambda h, m: (h, m, 0)),
            pl.BlockSpec((1, k_dim, n_dim), lambda h, m: (h, 0, 0)),
            pl.BlockSpec((1, 1, n_dim), lambda h, m: (h, 0, 0)),
        ],
        out_specs=pl.BlockSpec((1, tm, n_dim), lambda h, m: (h, m, 0)),
        compiler_params=pltpu.CompilerParams(
            dimension_semantics=("parallel", "parallel"),
            vmem_limit_bytes=_vmem_limit(blk)),
    )(x, w, b)
    return out[:, :m_dim, :] if m_pad != m_dim else out


# ----------------------------------------------------------------------------
# Kernel 3: fused per-head tail: conv3 -> ReLU -> flatten -> fc1 -> ReLU -> fc2
#           (conv3 output and the 512-wide hidden never touch HBM)
# ----------------------------------------------------------------------------
def _conv3_mlp_kernel(p3_ref, w3_ref, b3_ref, w1_ref, b1_ref, w2_ref, b2_ref,
                      o_ref, *, batch, s3):
    c3 = jnp.dot(p3_ref[0], w3_ref[0], preferred_element_type=jnp.float32)
    c3 = jnp.maximum(c3 + b3_ref[0], 0.0)                 # (B*S3, 64)
    # NHWC flatten: rows are (b, spatial) so this reshape is contiguous; for
    # s3 == 1 it is a no-op.  fc1 columns were permuted to match this order.
    h = c3.reshape(batch, s3 * c3.shape[-1]).astype(jnp.bfloat16)
    h = jnp.dot(h, w1_ref[0], preferred_element_type=jnp.float32)
    h = jnp.maximum(h + b1_ref[0], 0.0).astype(jnp.bfloat16)
    out = jnp.dot(h, w2_ref[0], preferred_element_type=jnp.float32) + b2_ref[0]
    o_ref[0] = out.astype(o_ref.dtype)


def conv3_mlp(p3, w3, b3, w1, b1, w2, b2, *, batch, s3):
    """p3: (H, B*S3, K3) bf16 -> (H, B, num_actions) f32."""
    num_heads, m_dim, k3 = p3.shape
    n3 = w3.shape[-1]
    d_dim, h_dim = w1.shape[-2], w1.shape[-1]
    a_dim = w2.shape[-1]
    assert m_dim == batch * s3 and d_dim == s3 * n3
    blk = (m_dim * k3 + k3 * n3 + d_dim * h_dim + h_dim * a_dim) * 2 \
        + (n3 + h_dim + a_dim) * 4 + batch * a_dim * 4 + m_dim * n3 * 4
    out = pl.pallas_call(
        functools.partial(_conv3_mlp_kernel, batch=batch, s3=s3),
        out_shape=jax.ShapeDtypeStruct((num_heads, batch, a_dim), jnp.float32),
        grid=(num_heads,),
        in_specs=[
            pl.BlockSpec((1, m_dim, k3), lambda h: (h, 0, 0)),
            pl.BlockSpec((1, k3, n3), lambda h: (h, 0, 0)),
            pl.BlockSpec((1, 1, n3), lambda h: (h, 0, 0)),
            pl.BlockSpec((1, d_dim, h_dim), lambda h: (h, 0, 0)),
            pl.BlockSpec((1, 1, h_dim), lambda h: (h, 0, 0)),
            pl.BlockSpec((1, h_dim, a_dim), lambda h: (h, 0, 0)),
            pl.BlockSpec((1, 1, a_dim), lambda h: (h, 0, 0)),
        ],
        out_specs=pl.BlockSpec((1, batch, a_dim), lambda h: (h, 0, 0)),
        compiler_params=pltpu.CompilerParams(
            dimension_semantics=("parallel",),
            vmem_limit_bytes=_vmem_limit(blk)),
    )(p3, w3, b3, w1, b1, w2, b2)
    return out


# ----------------------------------------------------------------------------
# NHWC im2col (wrapper-side glue; patch feature order = (kh, kw, C))
# ----------------------------------------------------------------------------
# TODO(synk): im2col for conv2/conv3 could be folded into the kernel (kh*kw
# grid axis with an f32 VMEM accumulator) to avoid the 4x/9x HBM inflation of
# the patch tensors; kept wrapper-side for simplicity/robustness.
def _im2col_nhwc(x, kh, kw, stride):
    """x: (..., H, W, C) -> (..., Ho*Wo, kh*kw*C)."""
    lead = x.shape[:-3]
    h, w, c = x.shape[-3:]
    ho = (h - kh) // stride + 1
    wo = (w - kw) // stride + 1
    cols = []
    for i in range(kh):
        for j in range(kw):
            cols.append(x[..., i:i + stride * ho:stride, j:j + stride * wo:stride, :])
    patches = jnp.stack(cols, axis=-2)                  # (..., Ho, Wo, kh*kw, C)
    return patches.reshape(lead + (ho * wo, kh * kw * c)), ho, wo


# ----------------------------------------------------------------------------
# Parameter init (kaiming-normal, zero bias — matches layer_init) + one-time
# conversion from PyTorch layout to the stacked / pre-transposed bf16 layout.
# ----------------------------------------------------------------------------
def _kaiming(key, shape, fan_in):
    return jax.random.normal(key, shape, jnp.float32) * jnp.sqrt(2.0 / fan_in)


def init_head_params_torch_layout(key, obs_c, output_dim, num_actions):
    ks = jax.random.split(key, 5)
    return {
        "c1w": _kaiming(ks[0], (32, obs_c, 8, 8), obs_c * 8 * 8),
        "c1b": jnp.zeros((32,), jnp.float32),
        "c2w": _kaiming(ks[1], (64, 32, 4, 4), 32 * 4 * 4),
        "c2b": jnp.zeros((64,), jnp.float32),
        "c3w": _kaiming(ks[2], (64, 64, 3, 3), 64 * 3 * 3),
        "c3b": jnp.zeros((64,), jnp.float32),
        "fc1w": _kaiming(ks[3], (512, output_dim), output_dim),
        "fc1b": jnp.zeros((512,), jnp.float32),
        "fc2w": _kaiming(ks[4], (num_actions, 512), 512),
        "fc2b": jnp.zeros((num_actions,), jnp.float32),
    }


def prepare_params(head_params, ho3, wo3):
    """One-time conversion:
      * conv weights (Cout,Cin,kh,kw) -> (kh*kw*Cin, Cout) flat matmul form,
      * conv1 weights/biases additionally CONCATENATED over heads along the
        output-channel axis (shared-patch single matmul, lane-dense output),
      * fc1 columns permuted from PyTorch's NCHW flatten order to our NHWC
        flatten order, fc weights pre-transposed,
      * weights -> bf16, biases -> f32 row vectors."""
    def conv_w(w):                          # (Cout,Cin,kh,kw) -> (kh*kw*Cin, Cout)
        cout, cin, kh, kw = w.shape
        return jnp.transpose(w, (2, 3, 1, 0)).reshape(kh * kw * cin, cout)

    def fc1_w(w):                           # cols (C,Ho,Wo) -> (Ho,Wo,C), then (D, 512)
        h512, d = w.shape
        c = d // (ho3 * wo3)
        w = w.reshape(h512, c, ho3, wo3)
        w = jnp.transpose(w, (0, 2, 3, 1)).reshape(h512, d)
        return w.T

    def stack_w(fn, name):
        return jnp.stack([fn(p[name]) for p in head_params]).astype(jnp.bfloat16)

    def stack_b(name):
        return jnp.stack([p[name].reshape(1, -1) for p in head_params]).astype(jnp.float32)

    c1w = jnp.concatenate([conv_w(p["c1w"]) for p in head_params],
                          axis=1).astype(jnp.bfloat16)              # (256, H*32)
    c1b = jnp.concatenate([p["c1b"] for p in head_params]
                          ).reshape(1, -1).astype(jnp.float32)       # (1, H*32)
    return {
        "c1w": c1w, "c1b": c1b,
        "c2w": stack_w(conv_w, "c2w"), "c2b": stack_b("c2b"),
        "c3w": stack_w(conv_w, "c3w"), "c3b": stack_b("c3b"),
        "fc1w": stack_w(fc1_w, "fc1w"), "fc1b": stack_b("fc1b"),
        "fc2w": stack_w(lambda w: w.T, "fc2w"), "fc2b": stack_b("fc2b"),
    }


# ----------------------------------------------------------------------------
# Forward: body = Identity (share_body=False); each head = conv stack + MLP
# ----------------------------------------------------------------------------
def nhead_critic_forward(params, x_nchw):
    """x_nchw: (B, C, H, W) f32 -> (num_heads, B, num_actions) f32."""
    num_heads = params["c2w"].shape[0]
    c1_out = params["c1w"].shape[1] // num_heads            # 32
    b = x_nchw.shape[0]
    x = jnp.transpose(x_nchw, (0, 2, 3, 1)).astype(jnp.bfloat16)   # NHWC once

    # conv1 (8x8, s4) + ReLU — im2col once, ONE matmul with all heads' filters
    # concatenated along the output-channel axis (patches read from HBM once).
    p1, ho1, wo1 = _im2col_nhwc(x, 8, 8, 4)
    p1 = p1.reshape(b * ho1 * wo1, -1)
    h1 = matmul_bias(p1, params["c1w"], params["c1b"],
                     relu=True, out_dtype=jnp.bfloat16)    # (B*Ho1*Wo1, H*32)
    h1 = h1.reshape(b, ho1, wo1, num_heads, c1_out)
    h1 = jnp.moveaxis(h1, 3, 0)                            # (H, B, Ho1, Wo1, 32)

    # conv2 (4x4, s2) + ReLU — per-head inputs, heads stacked in one launch.
    p2, ho2, wo2 = _im2col_nhwc(h1, 4, 4, 2)
    p2 = p2.reshape(num_heads, b * ho2 * wo2, -1)
    h2 = headed_matmul(p2, params["c2w"], params["c2b"],
                       relu=True, out_dtype=jnp.bfloat16)
    h2 = h2.reshape(num_heads, b, ho2, wo2, 64)

    # conv3 -> Flatten -> ReLU -> fc1 -> ReLU -> fc2, fused in ONE kernel/head.
    p3, ho3, wo3 = _im2col_nhwc(h2, 3, 3, 1)
    p3 = p3.reshape(num_heads, b * ho3 * wo3, -1)
    return conv3_mlp(p3, params["c3w"], params["c3b"],
                     params["fc1w"], params["fc1b"],
                     params["fc2w"], params["fc2b"],
                     batch=b, s3=ho3 * wo3)


if __name__ == "__main__":
    num_heads = 3
    num_actions = 6
    observation_shape = (4, 36, 36)   # smallest spatial that survives the conv stack
    batch = 2

    # conv-stack output_dim, traced the same way the torch module does it.
    s = (observation_shape[1] - 8) // 4 + 1     # 8
    s = (s - 4) // 2 + 1                        # 3
    ho3 = (s - 3) // 1 + 1                      # 1
    output_dim = 64 * ho3 * ho3                 # 64

    root = jax.random.PRNGKey(0)
    k_x, *k_heads = jax.random.split(root, 1 + num_heads)
    x = jax.random.normal(k_x, (batch,) + observation_shape, jnp.float32)
    torch_layout = [
        init_head_params_torch_layout(k, observation_shape[0], output_dim, num_actions)
        for k in k_heads
    ]
    params = prepare_params(torch_layout, ho3, ho3)

    fwd = jax.jit(nhead_critic_forward)
    out = jax.block_until_ready(fwd(params, x))
    assert out.shape == (num_heads, batch, num_actions), out.shape
    assert bool(jnp.all(jnp.isfinite(out)))
    print("KERNEL_OK")
</pallas_src>

<mosaic_0001>
module attributes {stable_mosaic.version = 11 : i64} {
  func.func @_matmul_bias_kernel(%arg0: i32, %arg1: memref<128x256xbf16, #tpu.memory_space<vmem>>, %arg2: memref<256x96xbf16, #tpu.memory_space<vmem>>, %arg3: memref<1x96xf32, #tpu.memory_space<vmem>>, %arg4: memref<128x96xbf16, #tpu.memory_space<vmem>>) attributes {dimension_semantics = [#tpu.dimension_semantics<parallel>], iteration_bounds = array<i64: 1>, scalar_prefetch = 0 : i64, scratch_operands = 0 : i64, tpu.core_type = #tpu.core_type<tc>, window_params = [{transform_indices = @transform_0, window_bounds = array<i64: 128, 256>}, {pipeline_mode = #tpu.pipeline_mode<synchronous>, transform_indices = @transform_1, window_bounds = array<i64: 256, 96>}, {pipeline_mode = #tpu.pipeline_mode<synchronous>, transform_indices = @transform_2, window_bounds = array<i64: 1, 96>}, {transform_indices = @transform_3, window_bounds = array<i64: 128, 96>}]} {
    %c0 = arith.constant 0 : index
    %c0_0 = arith.constant 0 : index
    %0 = vector.load %arg1[%c0, %c0_0] : memref<128x256xbf16, #tpu.memory_space<vmem>>, vector<128x256xbf16>
    %c0_1 = arith.constant 0 : index
    %c0_2 = arith.constant 0 : index
    %1 = vector.load %arg2[%c0_1, %c0_2] : memref<256x96xbf16, #tpu.memory_space<vmem>>, vector<256x96xbf16>
    %cst = arith.constant dense<0.000000e+00> : vector<128x96xf32>
    %2 = tpu.matmul %0, %1, %cst {dimension_numbers = #tpu.dot_dimension_numbers<[1], [0], [0], [1], [0, 0, 1, 1], [], []>} : vector<128x256xbf16>, vector<256x96xbf16>, vector<128x96xf32> -> vector<128x96xf32>
    %c0_3 = arith.constant 0 : index
    %c0_4 = arith.constant 0 : index
    %3 = vector.load %arg3[%c0_3, %c0_4] : memref<1x96xf32, #tpu.memory_space<vmem>>, vector<1x96xf32>
    %4 = vector.broadcast %3 : vector<1x96xf32> to vector<128x96xf32>
    %5 = arith.addf %2, %4 : vector<128x96xf32>
    %cst_5 = arith.constant 0.000000e+00 : f32
    %6 = vector.broadcast %cst_5 : f32 to vector<128x96xf32>
    %7 = arith.maximumf %5, %6 : vector<128x96xf32>
    %8 = arith.truncf %7 : vector<128x96xf32> to vector<128x96xbf16>
    %c0_6 = arith.constant 0 : index
    %c0_7 = arith.constant 0 : index
    %9 = vector.load %arg4[%c0_6, %c0_7] : memref<128x96xbf16, #tpu.memory_space<vmem>>, vector<128x96xbf16>
    tpu.vector_store %arg4[%c0_6, %c0_7], %8 {strides = array<i32>} : memref<128x96xbf16, #tpu.memory_space<vmem>>, vector<128x96xbf16>,
    return
  }
  func.func @transform_0(%arg0: i32) -> (i32, i32) {
    %c0_i32 = arith.constant 0 : i32
    %c0_i32_0 = arith.constant 0 : i32
    return %arg0, %c0_i32 : i32, i32
  }
  func.func @transform_1(%arg0: i32) -> (i32, i32) {
    %c0_i32 = arith.constant 0 : i32
    %c0_i32_0 = arith.constant 0 : i32
    %c0_i32_1 = arith.constant 0 : i32
    return %c0_i32, %c0_i32_0 : i32, i32
  }
  func.func @transform_2(%arg0: i32) -> (i32, i32) {
    %c0_i32 = arith.constant 0 : i32
    %c0_i32_0 = arith.constant 0 : i32
    %c0_i32_1 = arith.constant 0 : i32
    return %c0_i32, %c0_i32_0 : i32, i32
  }
  func.func @transform_3(%arg0: i32) -> (i32, i32) {
    %c0_i32 = arith.constant 0 : i32
    %c0_i32_0 = arith.constant 0 : i32
    return %arg0, %c0_i32 : i32, i32
  }
}

module attributes {stable_mosaic.version = 11 : i64} {
  func.func @_headed_matmul_kernel(%arg0: i32, %arg1: i32, %arg2: memref<1x32x512xbf16, #tpu.memory_space<vmem>>, %arg3: memref<1x512x64xbf16, #tpu.memory_space<vmem>>, %arg4: memref<1x1x64xf32, #tpu.memory_space<vmem>>, %arg5: memref<1x32x64xbf16, #tpu.memory_space<vmem>>) attributes {dimension_semantics = [#tpu.dimension_semantics<parallel>, #tpu.dimension_semantics<parallel>], iteration_bounds = array<i64: 3, 1>, scalar_prefetch = 0 : i64, scratch_operands = 0 : i64, tpu.core_type = #tpu.core_type<tc>, window_params = [{transform_indices = @transform_0, window_bounds = array<i64: 1, 32, 512>}, {transform_indices = @transform_1, window_bounds = array<i64: 1, 512, 64>}, {transform_indices = @transform_2, window_bounds = array<i64: 1, 1, 64>}, {transform_indices = @transform_3, window_bounds = array<i64: 1, 32, 64>}]} {
    %c0 = arith.constant 0 : index
    %c0_0 = arith.constant 0 : index
    %c0_1 = arith.constant 0 : index
    %0 = vector.load %arg2[%c0, %c0_0, %c0_1] : memref<1x32x512xbf16, #tpu.memory_space<vmem>>, vector<1x32x512xbf16>
    %1 = vector.shape_cast %0 : vector<1x32x512xbf16> to vector<32x512xbf16>
    %c0_2 = arith.constant 0 : index
    %c0_3 = arith.constant 0 : index
    %c0_4 = arith.constant 0 : index
    %2 = vector.load %arg3[%c0_2, %c0_3, %c0_4] : memref<1x512x64xbf16, #tpu.memory_space<vmem>>, vector<1x512x64xbf16>
    %3 = vector.shape_cast %2 : vector<1x512x64xbf16> to vector<512x64xbf16>
    %cst = arith.constant dense<0.000000e+00> : vector<32x64xf32>
    %4 = tpu.matmul %1, %3, %cst {dimension_numbers = #tpu.dot_dimension_numbers<[1], [0], [0], [1], [0, 0, 1, 1], [], []>} : vector<32x512xbf16>, vector<512x64xbf16>, vector<32x64xf32> -> vector<32x64xf32>
    %c0_5 = arith.constant 0 : index
    %c0_6 = arith.constant 0 : index
    %c0_7 = arith.constant 0 : index
    %5 = vector.load %arg4[%c0_5, %c0_6, %c0_7] : memref<1x1x64xf32, #tpu.memory_space<vmem>>, vector<1x1x64xf32>
    %6 = vector.shape_cast %5 : vector<1x1x64xf32> to vector<1x64xf32>
    %7 = vector.broadcast %6 : vector<1x64xf32> to vector<32x64xf32>
    %8 = arith.addf %4, %7 : vector<32x64xf32>
    %cst_8 = arith.constant 0.000000e+00 : f32
    %9 = vector.broadcast %cst_8 : f32 to vector<32x64xf32>
    %10 = arith.maximumf %8, %9 : vector<32x64xf32>
    %11 = arith.truncf %10 : vector<32x64xf32> to vector<32x64xbf16>
    %c0_9 = arith.constant 0 : index
    %c0_10 = arith.constant 0 : index
    %c0_11 = arith.constant 0 : index
    %12 = vector.load %arg5[%c0_9, %c0_10, %c0_11] : memref<1x32x64xbf16, #tpu.memory_space<vmem>>, vector<1x32x64xbf16>
    %13 = vector.shape_cast %12 : vector<1x32x64xbf16> to vector<32x64xbf16>
    %14 = vector.shape_cast %11 : vector<32x64xbf16> to vector<1x32x64xbf16>
    tpu.vector_store %arg5[%c0_9, %c0_10, %c0_11], %14 {strides = array<i32>} : memref<1x32x64xbf16, #tpu.memory_space<vmem>>, vector<1x32x64xbf16>,
    return
  }
  func.func @transform_0(%arg0: i32, %arg1: i32) -> (i32, i32, i32) {
    %c0_i32 = arith.constant 0 : i32
    %c0_i32_0 = arith.constant 0 : i32
    return %arg0, %arg1, %c0_i32 : i32, i32, i32
  }
  func.func @transform_1(%arg0: i32, %arg1: i32) -> (i32, i32, i32) {
    %c0_i32 = arith.constant 0 : i32
    %c0_i32_0 = arith.constant 0 : i32
    %c0_i32_1 = arith.constant 0 : i32
    return %arg0, %c0_i32, %c0_i32_0 : i32, i32, i32
  }
  func.func @transform_2(%arg0: i32, %arg1: i32) -> (i32, i32, i32) {
    %c0_i32 = arith.constant 0 : i32
    %c0_i32_0 = arith.constant 0 : i32
    %c0_i32_1 = arith.constant 0 : i32
    return %arg0, %c0_i32, %c0_i32_0 : i32, i32, i32
  }
  func.func @transform_3(%arg0: i32, %arg1: i32) -> (i32, i32, i32) {
    %c0_i32 = arith.constant 0 : i32
    %c0_i32_0 = arith.constant 0 : i32
    return %arg0, %arg1, %c0_i32 : i32, i32, i32
  }
}

module attributes {stable_mosaic.version = 11 : i64} {
  func.func @_conv3_mlp_kernel(%arg0: i32, %arg1: memref<1x2x576xbf16, #tpu.memory_space<vmem>>, %arg2: memref<1x576x64xbf16, #tpu.memory_space<vmem>>, %arg3: memref<1x1x64xf32, #tpu.memory_space<vmem>>, %arg4: memref<1x64x512xbf16, #tpu.memory_space<vmem>>, %arg5: memref<1x1x512xf32, #tpu.memory_space<vmem>>, %arg6: memref<1x512x6xbf16, #tpu.memory_space<vmem>>, %arg7: memref<1x1x6xf32, #tpu.memory_space<vmem>>, %arg8: memref<1x2x6xf32, #tpu.memory_space<vmem>>) attributes {dimension_semantics = [#tpu.dimension_semantics<parallel>], iteration_bounds = array<i64: 3>, scalar_prefetch = 0 : i64, scratch_operands = 0 : i64, tpu.core_type = #tpu.core_type<tc>, window_params = [{transform_indices = @transform_0, window_bounds = array<i64: 1, 2, 576>}, {transform_indices = @transform_1, window_bounds = array<i64: 1, 576, 64>}, {transform_indices = @transform_2, window_bounds = array<i64: 1, 1, 64>}, {transform_indices = @transform_3, window_bounds = array<i64: 1, 64, 512>}, {transform_indices = @transform_4, window_bounds = array<i64: 1, 1, 512>}, {transform_indices = @transform_5, window_bounds = array<i64: 1, 512, 6>}, {transform_indices = @transform_6, window_bounds = array<i64: 1, 1, 6>}, {transform_indices = @transform_7, window_bounds = array<i64: 1, 2, 6>}]} {
    %c0 = arith.constant 0 : index
    %c0_0 = arith.constant 0 : index
    %c0_1 = arith.constant 0 : index
    %0 = vector.load %arg1[%c0, %c0_0, %c0_1] : memref<1x2x576xbf16, #tpu.memory_space<vmem>>, vector<1x2x576xbf16>
    %1 = vector.shape_cast %0 : vector<1x2x576xbf16> to vector<2x576xbf16>
    %c0_2 = arith.constant 0 : index
    %c0_3 = arith.constant 0 : index
    %c0_4 = arith.constant 0 : index
    %2 = vector.load %arg2[%c0_2, %c0_3, %c0_4] : memref<1x576x64xbf16, #tpu.memory_space<vmem>>, vector<1x576x64xbf16>
    %3 = vector.shape_cast %2 : vector<1x576x64xbf16> to vector<576x64xbf16>
    %cst = arith.constant dense<0.000000e+00> : vector<2x64xf32>
    %4 = tpu.matmul %1, %3, %cst {dimension_numbers = #tpu.dot_dimension_numbers<[1], [0], [0], [1], [0, 0, 1, 1], [], []>} : vector<2x576xbf16>, vector<576x64xbf16>, vector<2x64xf32> -> vector<2x64xf32>
    %c0_5 = arith.constant 0 : index
    %c0_6 = arith.constant 0 : index
    %c0_7 = arith.constant 0 : index
    %5 = vector.load %arg3[%c0_5, %c0_6, %c0_7] : memref<1x1x64xf32, #tpu.memory_space<vmem>>, vector<1x1x64xf32>
    %6 = vector.shape_cast %5 : vector<1x1x64xf32> to vector<1x64xf32>
    %7 = vector.broadcast %6 : vector<1x64xf32> to vector<2x64xf32>
    %8 = arith.addf %4, %7 : vector<2x64xf32>
    %cst_8 = arith.constant 0.000000e+00 : f32
    %9 = vector.broadcast %cst_8 : f32 to vector<2x64xf32>
    %10 = arith.maximumf %8, %9 : vector<2x64xf32>
    %11 = arith.truncf %10 : vector<2x64xf32> to vector<2x64xbf16>
    %c0_9 = arith.constant 0 : index
    %c0_10 = arith.constant 0 : index
    %c0_11 = arith.constant 0 : index
    %12 = vector.load %arg4[%c0_9, %c0_10, %c0_11] : memref<1x64x512xbf16, #tpu.memory_space<vmem>>, vector<1x64x512xbf16>
    %13 = vector.shape_cast %12 : vector<1x64x512xbf16> to vector<64x512xbf16>
    %cst_12 = arith.constant dense<0.000000e+00> : vector<2x512xf32>
    %14 = tpu.matmul %11, %13, %cst_12 {dimension_numbers = #tpu.dot_dimension_numbers<[1], [0], [0], [1], [0, 0, 1, 1], [], []>} : vector<2x64xbf16>, vector<64x512xbf16>, vector<2x512xf32> -> vector<2x512xf32>
    %c0_13 = arith.constant 0 : index
    %c0_14 = arith.constant 0 : index
    %c0_15 = arith.constant 0 : index
    %15 = vector.load %arg5[%c0_13, %c0_14, %c0_15] : memref<1x1x512xf32, #tpu.memory_space<vmem>>, vector<1x1x512xf32>
    %16 = vector.shape_cast %15 : vector<1x1x512xf32> to vector<1x512xf32>
    %17 = vector.broadcast %16 : vector<1x512xf32> to vector<2x512xf32>
    %18 = arith.addf %14, %17 : vector<2x512xf32>
    %cst_16 = arith.constant 0.000000e+00 : f32
    %19 = vector.broadcast %cst_16 : f32 to vector<2x512xf32>
    %20 = arith.maximumf %18, %19 : vector<2x512xf32>
    %21 = arith.truncf %20 : vector<2x512xf32> to vector<2x512xbf16>
    %c0_17 = arith.constant 0 : index
    %c0_18 = arith.constant 0 : index
    %c0_19 = arith.constant 0 : index
    %22 = vector.load %arg6[%c0_17, %c0_18, %c0_19] : memref<1x512x6xbf16, #tpu.memory_space<vmem>>, vector<1x512x6xbf16>
    %23 = vector.shape_cast %22 : vector<1x512x6xbf16> to vector<512x6xbf16>
    %cst_20 = arith.constant dense<0.000000e+00> : vector<2x6xf32>
    %24 = tpu.matmul %21, %23, %cst_20 {dimension_numbers = #tpu.dot_dimension_numbers<[1], [0], [0], [1], [0, 0, 1, 1], [], []>} : vector<2x512xbf16>, vector<512x6xbf16>, vector<2x6xf32> -> vector<2x6xf32>
    %c0_21 = arith.constant 0 : index
    %c0_22 = arith.constant 0 : index
    %c0_23 = arith.constant 0 : index
    %25 = vector.load %arg7[%c0_21, %c0_22, %c0_23] : memref<1x1x6xf32, #tpu.memory_space<vmem>>, vector<1x1x6xf32>
    %26 = vector.shape_cast %25 : vector<1x1x6xf32> to vector<1x6xf32>
    %27 = vector.broadcast %26 : vector<1x6xf32> to vector<2x6xf32>
    %28 = arith.addf %24, %27 : vector<2x6xf32>
    %c0_24 = arith.constant 0 : index
    %c0_25 = arith.constant 0 : index
    %c0_26 = arith.constant 0 : index
    %29 = vector.load %arg8[%c0_24, %c0_25, %c0_26] : memref<1x2x6xf32, #tpu.memory_space<vmem>>, vector<1x2x6xf32>
    %30 = vector.shape_cast %29 : vector<1x2x6xf32> to vector<2x6xf32>
    %31 = vector.shape_cast %28 : vector<2x6xf32> to vector<1x2x6xf32>
    tpu.vector_store %arg8[%c0_24, %c0_25, %c0_26], %31 {strides = array<i32>} : memref<1x2x6xf32, #tpu.memory_space<vmem>>, vector<1x2x6xf32>,
    return
  }
  func.func @transform_0(%arg0: i32) -> (i32, i32, i32) {
    %c0_i32 = arith.constant 0 : i32
    %c0_i32_0 = arith.constant 0 : i32
    %c0_i32_1 = arith.constant 0 : i32
    return %arg0, %c0_i32, %c0_i32_0 : i32, i32, i32
  }
  func.func @transform_1(%arg0: i32) -> (i32, i32, i32) {
    %c0_i32 = arith.constant 0 : i32
    %c0_i32_0 = arith.constant 0 : i32
    %c0_i32_1 = arith.constant 0 : i32
    return %arg0, %c0_i32, %c0_i32_0 : i32, i32, i32
  }
  func.func @transform_2(%arg0: i32) -> (i32, i32, i32) {
    %c0_i32 = arith.constant 0 : i32
    %c0_i32_0 = arith.constant 0 : i32
    %c0_i32_1 = arith.constant 0 : i32
    return %arg0, %c0_i32, %c0_i32_0 : i32, i32, i32
  }
  func.func @transform_3(%arg0: i32) -> (i32, i32, i32) {
    %c0_i32 = arith.constant 0 : i32
    %c0_i32_0 = arith.constant 0 : i32
    %c0_i32_1 = arith.constant 0 : i32
    return %arg0, %c0_i32, %c0_i32_0 : i32, i32, i32
  }
  func.func @transform_4(%arg0: i32) -> (i32, i32, i32) {
    %c0_i32 = arith.constant 0 : i32
    %c0_i32_0 = arith.constant 0 : i32
    %c0_i32_1 = arith.constant 0 : i32
    return %arg0, %c0_i32, %c0_i32_0 : i32, i32, i32
  }
  func.func @transform_5(%arg0: i32) -> (i32, i32, i32) {
    %c0_i32 = arith.constant 0 : i32
    %c0_i32_0 = arith.constant 0 : i32
    %c0_i32_1 = arith.constant 0 : i32
    return %arg0, %c0_i32, %c0_i32_0 : i32, i32, i32
  }
  func.func @transform_6(%arg0: i32) -> (i32, i32, i32) {
    %c0_i32 = arith.constant 0 : i32
    %c0_i32_0 = arith.constant 0 : i32
    %c0_i32_1 = arith.constant 0 : i32
    return %arg0, %c0_i32, %c0_i32_0 : i32, i32, i32
  }
  func.func @transform_7(%arg0: i32) -> (i32, i32, i32) {
    %c0_i32 = arith.constant 0 : i32
    %c0_i32_0 = arith.constant 0 : i32
    %c0_i32_1 = arith.constant 0 : i32
    return %arg0, %c0_i32, %c0_i32_0 : i32, i32, i32
  }
}

</mosaic_0001>

<bundles_post_ra>
// kernel: nhead_critic_forward.3
= control target key start
LH: loop header
LB: loop body
LE: loop exit
PB: predicated region body
PF: predicated region fallthrough
CT: control target
= control target key end

     0   :  { %vm423_vm0 = vcmask 781312   ;;  %s830_s1 = inlined_call_operand.vmem [shape: bf16[256,96], index: 1, kind: input, shape index: {}]   ;;  %s831_s0 = inlined_call_operand.vmem [shape: bf16[128,256], index: 0, kind: input, shape index: {}]   ;;  %s832_s2 = inlined_call_operand.vmem [shape: f32[1,96], index: 2, kind: input, shape index: {}]   ;;  %s833_s3 = inlined_call_operand.vmem [shape: bf16[128,96], index: 3, kind: output, shape index: {}]  }
   0x1   :  { %v589_v0 = vld [vmem:[%s830_s1 + $0x40] sm:$0xff]   ;;  %v591_v2 = vld [vmem:[%s830_s1 + $0x48] sm:$0xff]   ;;  %v593_v4 = vld [vmem:[%s830_s1 + $0x50] sm:$0xff]  }
   0x2   :  { %v590_v1 = vld [vmem:[%s830_s1] sm:$0xff]   ;;  %509 = vmatprep.subr.bf16.mxu0 %v589_v0  ;;  %573 = vmatprep.subr.bf16.mxu1 %v589_v0  ;;  %v592_v3 = vld [vmem:[%s830_s1 + $0x8] sm:$0xff]   ;;  %v594_v5 = vld [vmem:[%s830_s1 + $0x10] sm:$0xff]  }
   0x3   :  { %510 = vmatpush3.bf16.msra.mxu0 %v590_v1  ;;  %581 = vmatpush3.bf16.msra.mxu1 %v590_v1  ;;  %v595_v6 = vld [vmem:[%s830_s1 + $0x58] sm:$0xff]   ;;  %v597_v8 = vld [vmem:[%s830_s1 + $0x60] sm:$0xff]   ;;  %v599_v10 = vld [vmem:[%s830_s1 + $0x68] sm:$0xff]  }
   0x4   :  { %511 = vmatprep.subr.bf16.mxu0 %v591_v2  ;;  %574 = vmatprep.subr.bf16.mxu1 %v591_v2  ;;  %v596_v7 = vld [vmem:[%s830_s1 + $0x18] sm:$0xff]   ;;  %v598_v9 = vld [vmem:[%s830_s1 + $0x20] sm:$0xff]   ;;  %v600_v13 = vld [vmem:[%s830_s1 + $0x28] sm:$0xff]  }
   0x5   :  { %v607_v11 = vld [vmem:[%s831_s0 + $0x4] ss:$8 sps:$4 sm:$0xff]   ;;  %v601_v14 = vld [vmem:[%s830_s1 + $0x70] sm:$0xff]   ;;  %v603_v16 = vld [vmem:[%s830_s1 + $0x78] sm:$0xff]  }
   0x6   :  { %v610_v12 = vld [vmem:[%s831_s0 + $0x44] ss:$8 sps:$4 sm:$0xff]   ;;  %278 = vmatprep.mubr.bf16.mxu0 %v607_v11  ;;  %v602_v15 = vld [vmem:[%s830_s1 + $0x30] sm:$0xff]   ;;  %v604_v17 = vld [vmem:[%s830_s1 + $0x38] sm:$0xff]  }
   0x7   :  { %512 = vmatpush3.bf16.msra.mxu0 %v592_v3  ;;  %582 = vmatpush3.bf16.msra.mxu1 %v592_v3  ;;  %v605_v18 = vld [vmem:[%s831_s0] ss:$8 sps:$4 sm:$0xff]   ;;  %v611_v20 = vld [vmem:[%s831_s0 + $0x14] ss:$8 sps:$4 sm:$0xff]   ;;  %v615_v22 = vld [vmem:[%s831_s0 + $0x10] ss:$8 sps:$4 sm:$0xff]  }
   0x8   :  { %513 = vmatprep.subr.bf16.mxu0 %v593_v4  ;;  %575 = vmatprep.subr.bf16.mxu1 %v593_v4  ;;  %v608_v19 = vld [vmem:[%s831_s0 + $0x40] ss:$8 sps:$4 sm:$0xff]   ;;  %v613_v21 = vld [vmem:[%s831_s0 + $0x54] ss:$8 sps:$4 sm:$0xff]   ;;  %v616_v23 = vld [vmem:[%s831_s0 + $0x50] ss:$8 sps:$4 sm:$0xff]  }
   0x9   :  { %310 = vmatprep.mubr.bf16.mxu1 %v610_v12  ;;  %v617_v24 = vld [vmem:[%s831_s0 + $0x24] ss:$8 sps:$4 sm:$0xff]   ;;  %v621_v26 = vld [vmem:[%s831_s0 + $0x20] ss:$8 sps:$4 sm:$0xff]   ;;  %v623_v28 = vld [vmem:[%s831_s0 + $0x34] ss:$8 sps:$4 sm:$0xff]  }
   0xa   :  { %v619_v25 = vld [vmem:[%s831_s0 + $0x64] ss:$8 sps:$4 sm:$0xff]   ;;  %v622_v27 = vld [vmem:[%s831_s0 + $0x60] ss:$8 sps:$4 sm:$0xff]   ;;  %v625_v29 = vld [vmem:[%s831_s0 + $0x74] ss:$8 sps:$4 sm:$0xff]  }
   0xb   :  { %514 = vmatpush3.bf16.msra.mxu0 %v594_v5  ;;  %583 = vmatpush3.bf16.msra.mxu1 %v594_v5  ;;  %v627_v30 = vld [vmem:[%s831_s0 + $0x30] ss:$8 sps:$4 sm:$0xff]   ;;  %v748_v34 = vld [vmem:[%s832_s2] ss:$0 sm:$0xff] }
   0xc   :  { %515 = vmatprep.subr.bf16.mxu0 %v595_v6  ;;  %576 = vmatprep.subr.bf16.mxu1 %v595_v6  ;;  %v628_v31 = vld [vmem:[%s831_s0 + $0x70] ss:$8 sps:$4 sm:$0xff]  }
   0xf   :  { %516 = vmatpush3.bf16.msra.mxu0 %v596_v7  ;;  %584 = vmatpush3.bf16.msra.mxu1 %v596_v7 }
  0x10   :  { %517 = vmatprep.subr.bf16.mxu0 %v597_v8  ;;  %577 = vmatprep.subr.bf16.mxu1 %v597_v8 }
  0x13   :  { %518 = vmatpush3.bf16.msra.mxu0 %v598_v9  ;;  %585 = vmatpush3.bf16.msra.mxu1 %v598_v9 }
  0x14   :  { %519 = vmatprep.subr.bf16.mxu0 %v599_v10  ;;  %578 = vmatprep.subr.bf16.mxu1 %v599_v10 }
  0x17   :  { %520 = vmatpush3.bf16.msra.mxu0 %v600_v13  ;;  %586 = vmatpush3.bf16.msra.mxu1 %v600_v13 }
  0x18   :  { %521 = vmatprep.subr.bf16.mxu0 %v601_v14  ;;  %579 = vmatprep.subr.bf16.mxu1 %v601_v14 }
  0x1b   :  { %522 = vmatpush3.bf16.msra.mxu0 %v602_v15  ;;  %587 = vmatpush3.bf16.msra.mxu1 %v602_v15 }
  0x1c   :  { %523 = vmatprep.subr.bf16.mxu0 %v603_v16  ;;  %580 = vmatprep.subr.bf16.mxu1 %v603_v16 }
  0x1f   :  { %524 = vmatpush3.bf16.msra.mxu0 %v604_v17  ;;  %588 = vmatpush3.bf16.msra.mxu1 %v604_v17 }
  0x22   :  { %279 = vmatmul.mubr.bf16.vlgmr.msra.gmra.mrb[0].mxu0 %v605_v18  ;;  %311 = vmatmul.mubr.bf16.vlgmr.msra.gmra.mrb[0].mxu1 %v608_v19 }
  0x23   :  { %286 = vmatprep.mubr.bf16.mxu0 %v611_v20  ;;  %318 = vmatprep.mubr.bf16.mxu1 %v613_v21 }
  0x2a   :  { %287 = vmatmul.mubr.bf16.gmra.mrb[4].mxu0 %v615_v22  ;;  %319 = vmatmul.mubr.bf16.gmra.mrb[4].mxu1 %v616_v23 }
  0x2b   :  { %294 = vmatprep.mubr.bf16.mxu0 %v617_v24  ;;  %326 = vmatprep.mubr.bf16.mxu1 %v619_v25 }
  0x32   :  { %295 = vmatmul.mubr.bf16.gmra.mrb[8].mxu0 %v621_v26  ;;  %327 = vmatmul.mubr.bf16.gmra.mrb[8].mxu1 %v622_v27 }
  0x33   :  { %302 = vmatprep.mubr.bf16.mxu0 %v623_v28  ;;  %334 = vmatprep.mubr.bf16.mxu1 %v625_v29 }
  0x3a   :  { %303 = vmatmul.mubr.bf16.gmra.mrb[12].mxu0 %v627_v30  ;;  %335 = vmatmul.mubr.bf16.gmra.mrb[12].mxu1 %v628_v31 }
  0xf5   :  { %v525_v32 = vpop.f32.mrb[0].mxu0  ;;  %v549_v33 = vpop.f32.mrb[0].mxu1 }
  0xf6   :  { %v526_v35 = vpop.f32.mrb[1].mxu0  ;;  %v550_v36 = vpop.f32.mrb[1].mxu1 }
  0xf7   :  { %v527_v37 = vadd.f32 %v526_v35, %v525_v32  ;;  %v551_v38 = vadd.f32 %v550_v36, %v549_v33  ;;  %v528_v39 = vpop.f32.mrb[2].mxu0  ;;  %v552_v40 = vpop.f32.mrb[2].mxu1 }
  0xf8   :  { %v529_v41 = vpop.f32.mrb[3].mxu0  ;;  %v553_v42 = vpop.f32.mrb[3].mxu1 }
  0xf9   :  { %v281_v43 = vadd.f32 %v527_v37, %v748_v34  ;;  %v313_v44 = vadd.f32 %v551_v38, %v748_v34  ;;  %v530_v45 = vadd.f32 %v529_v41, %v528_v39  ;;  %v554_v46 = vadd.f32 %v553_v42, %v552_v40 }
  0xfb   :  { %v343_v47 = vmax.f32 %v281_v43, 0.0  ;;  %v351_v48 = vmax.f32 %v313_v44, 0.0  ;;  %v284_v49 = vadd.f32 %v530_v45, %v748_v34  ;;  %v316_v50 = vadd.f32 %v554_v46, %v748_v34 }
  0xfd   :  { %v493_v51 = vpack.c.bf16 %v343_v47, %v343_v47  ;;  %v501_v52 = vpack.c.bf16 %v351_v48, %v351_v48  ;;  %v344_v53 = vmax.f32 %v284_v49, 0.0  ;;  %v352_v54 = vmax.f32 %v316_v50, 0.0  ;;  %v531_v55 = vpop.f32.mrb[4].mxu0  ;;  %v555_v56 = vpop.f32.mrb[4].mxu1 }
  0xfe   :  { %v532_v57 = vpop.f32.mrb[5].mxu0  ;;  %v556_v58 = vpop.f32.mrb[5].mxu1 }
  0xff   :  { %424 = vst.msk [vmem:[%s833_s3] sm:$0xf] %vm423_vm0, %v493_v51  ;;  %432 = vst.msk [vmem:[%s833_s3 + $0x20] sm:$0xf] %vm423_vm0, %v501_v52  ;;  %v494_v59 = vpack.c.bf16 %v344_v53, %v344_v53  ;;  %v502_v60 = vpack.c.bf16 %v352_v54, %v352_v54  ;;  %v533_v61 = vadd.f32 %v532_v57, %v531_v55  ;;  %v534_v63 = vpop.f32.mrb[6].mxu0  ;;  %v558_v0 = vpop.f32.mrb[6].mxu1 }
 0x100   :  { %v557_v62 = vadd.f32 %v556_v58, %v555_v56  ;;  %v535_v1 = vpop.f32.mrb[7].mxu0  ;;  %v559_v2 = vpop.f32.mrb[7].mxu1 }
 0x101   :  { %425 = vst.msk [vmem:[%s833_s3 + $0x4] sm:$0xf] %vm423_vm0, %v494_v59  ;;  %433 = vst.msk [vmem:[%s833_s3 + $0x24] sm:$0xf] %vm423_vm0, %v502_v60  ;;  %v289_v3 = vadd.f32 %v533_v61, %v748_v34  ;;  %v536_v5 = vadd.f32 %v535_v1, %v534_v63  ;;  %v560_v6 = vadd.f32 %v559_v2, %v558_v0 }
 0x102   :  { %v321_v4 = vadd.f32 %v557_v62, %v748_v34 }
 0x103   :  { %v345_v7 = vmax.f32 %v289_v3, 0.0  ;;  %v292_v9 = vadd.f32 %v536_v5, %v748_v34  ;;  %v324_v10 = vadd.f32 %v560_v6, %v748_v34 }
 0x104   :  { %v353_v8 = vmax.f32 %v321_v4, 0.0 }
 0x105   :  { %v495_v11 = vpack.c.bf16 %v345_v7, %v345_v7  ;;  %v346_v13 = vmax.f32 %v292_v9, 0.0  ;;  %v354_v14 = vmax.f32 %v324_v10, 0.0  ;;  %v537_v15 = vpop.f32.mrb[8].mxu0  ;;  %v561_v16 = vpop.f32.mrb[8].mxu1 }
 0x106   :  { %v503_v12 = vpack.c.bf16 %v353_v8, %v353_v8  ;;  %v538_v17 = vpop.f32.mrb[9].mxu0  ;;  %v562_v18 = vpop.f32.mrb[9].mxu1 }
 0x107   :  { %426 = vst.msk [vmem:[%s833_s3 + $0x8] sm:$0xf] %vm423_vm0, %v495_v11  ;;  %v496_v19 = vpack.c.bf16 %v346_v13, %v346_v13  ;;  %v504_v20 = vpack.c.bf16 %v354_v14, %v354_v14  ;;  %v539_v21 = vadd.f32 %v538_v17, %v537_v15  ;;  %v563_v22 = vadd.f32 %v562_v18, %v561_v16  ;;  %v540_v23 = vpop.f32.mrb[10].mxu0  ;;  %v564_v24 = vpop.f32.mrb[10].mxu1 }
 0x108   :  { %434 = vst.msk [vmem:[%s833_s3 + $0x28] sm:$0xf] %vm423_vm0, %v503_v12  ;;  %v541_v25 = vpop.f32.mrb[11].mxu0  ;;  %v565_v26 = vpop.f32.mrb[11].mxu1 }
 0x109   :  { %427 = vst.msk [vmem:[%s833_s3 + $0xc] sm:$0xf] %vm423_vm0, %v496_v19  ;;  %435 = vst.msk [vmem:[%s833_s3 + $0x2c] sm:$0xf] %vm423_vm0, %v504_v20  ;;  %v297_v27 = vadd.f32 %v539_v21, %v748_v34  ;;  %v329_v28 = vadd.f32 %v563_v22, %v748_v34  ;;  %v542_v29 = vadd.f32 %v541_v25, %v540_v23 }
 0x10a   :  { %v566_v30 = vadd.f32 %v565_v26, %v564_v24 }
 0x10b   :  { %v347_v31 = vmax.f32 %v297_v27, 0.0  ;;  %v355_v32 = vmax.f32 %v329_v28, 0.0  ;;  %v300_v33 = vadd.f32 %v542_v29, %v748_v34 }
 0x10c   :  { %v332_v35 = vadd.f32 %v566_v30, %v748_v34 }
 0x10d   :  { %v497_v36 = vpack.c.bf16 %v347_v31, %v347_v31  ;;  %v505_v37 = vpack.c.bf16 %v355_v32, %v355_v32  ;;  %v348_v38 = vmax.f32 %v300_v33, 0.0  ;;  %v543_v40 = vpop.f32.mrb[12].mxu0  ;;  %v567_v41 = vpop.f32.mrb[12].mxu1 }
 0x10e   :  { %v356_v39 = vmax.f32 %v332_v35, 0.0  ;;  %v544_v42 = vpop.f32.mrb[13].mxu0  ;;  %v568_v43 = vpop.f32.mrb[13].mxu1 }
 0x10f   :  { %428 = vst.msk [vmem:[%s833_s3 + $0x10] sm:$0xf] %vm423_vm0, %v497_v36  ;;  %436 = vst.msk [vmem:[%s833_s3 + $0x30] sm:$0xf] %vm423_vm0, %v505_v37  ;;  %v498_v44 = vpack.c.bf16 %v348_v38, %v348_v38  ;;  %v545_v46 = vadd.f32 %v544_v42, %v543_v40  ;;  %v569_v47 = vadd.f32 %v568_v43, %v567_v41  ;;  %v546_v48 = vpop.f32.mrb[14].mxu0  ;;  %v570_v49 = vpop.f32.mrb[14].mxu1 }
 0x110   :  { %v506_v45 = vpack.c.bf16 %v356_v39, %v356_v39  ;;  %v547_v50 = vpop.f32.mrb[15].mxu0  ;;  %v571_v51 = vpop.f32.mrb[15].mxu1 }
 0x111   :  { %429 = vst.msk [vmem:[%s833_s3 + $0x14] sm:$0xf] %vm423_vm0, %v498_v44  ;;  %v305_v52 = vadd.f32 %v545_v46, %v748_v34  ;;  %v337_v53 = vadd.f32 %v569_v47, %v748_v34  ;;  %v548_v54 = vadd.f32 %v547_v50, %v546_v48  ;;  %v572_v55 = vadd.f32 %v571_v51, %v570_v49 }
 0x112   :  { %437 = vst.msk [vmem:[%s833_s3 + $0x34] sm:$0xf] %vm423_vm0, %v506_v45 }
 0x113   :  { %v349_v56 = vmax.f32 %v305_v52, 0.0  ;;  %v357_v57 = vmax.f32 %v337_v53, 0.0  ;;  %v308_v58 = vadd.f32 %v548_v54, %v748_v34  ;;  %v340_v59 = vadd.f32 %v572_v55, %v748_v34 }
 0x115   :  { %v499_v60 = vpack.c.bf16 %v349_v56, %v349_v56  ;;  %v507_v61 = vpack.c.bf16 %v357_v57, %v357_v57  ;;  %v350_v62 = vmax.f32 %v308_v58, 0.0  ;;  %v358_v63 = vmax.f32 %v340_v59, 0.0 }
 0x117   :  { %430 = vst.msk [vmem:[%s833_s3 + $0x18] sm:$0xf] %vm423_vm0, %v499_v60  ;;  %438 = vst.msk [vmem:[%s833_s3 + $0x38] sm:$0xf] %vm423_vm0, %v507_v61  ;;  %v500_v0 = vpack.c.bf16 %v350_v62, %v350_v62  ;;  %v508_v1 = vpack.c.bf16 %v358_v63, %v358_v63 }
 0x119   :  { %431 = vst.msk [vmem:[%s833_s3 + $0x1c] sm:$0xf] %vm423_vm0, %v500_v0  ;;  %439 = vst.msk [vmem:[%s833_s3 + $0x3c] sm:$0xf] %vm423_vm0, %v508_v1 }

// kernel: nhead_critic_forward.4
= control target key start
LH: loop header
LB: loop body
LE: loop exit
PB: predicated region body
PF: predicated region fallthrough
CT: control target
= control target key end

     0   :  { %s1026_s12 = smov 0   ;;  %s1028_s13 = smov 0   ;;  %s1109_s0 = inlined_call_operand.vmem [shape: bf16[3,32,512], index: 0, kind: input, shape index: {}]   ;;  %s1110_s1 = inlined_call_operand.vmem [shape: bf16[3,512,64], index: 1, kind: input, shape index: {}]   ;;  %s1111_s2 = inlined_call_operand.vmem [shape: f32[3,1,64], index: 2, kind: input, shape index: {}]   ;;  %s1112_s3 = inlined_call_operand.vmem [shape: bf16[3,32,64], index: 3, kind: output, shape index: {}]  }
   0x1   :  { %s1030_s14 = smov 0  }
   0x2 LB: > { %s25_s15 = sadd.s32 1, %s1000_s13  ;;  %p797_p0 = scmp.ge.s32.totalorder %s1004_s14, 1  ;;  %s1004_s14 = sphi %s1030_s14, %s13_s14   ;;  %s1000_s13 = sphi %s1028_s13, %s1114_s13   ;;  %s996_s12 = sphi %s1026_s12, %s1113_s12  }
   0x3   : > { %p27_p1 = scmp.ge.s32.totalorder %s25_s15, 3  ;;  %p177_p2 = scmp.lt.s32.totalorder %s1004_s14, 4 }
   0x5   : > { %s1116_s15 = smov (%p27_p1, %s25_s15), 0  ;;  %p178_p3 = pnand %p797_p0, %p177_p2 }
   0x6   : > { %p219_p4 = scmp.lt.s32.totalorder (!%p178_p3), %s996_s12, 2  ;;  %vm677_vm0 = vcmask (!%p178_p3), 519168  }
   0x7   : > { %181 = sbr.rel (%p178_p3) target bundleno = 285 (0x11d), region = 32 }
   0xe   : > { %s1118_s12 = smov (!%p219_p4, %s996_s12), 2 }
   0xf   : > { %s852_s16 = sshll.u32 %s1118_s12, 8  ;;  %s851_s20 = sshll.u32 %s1118_s12, 6 }
  0x10   : > { %s1050_s19 = scalar_lea.vmem %s1110_s1, %s852_s16  ;;  %s227_s23 = scalar_lea.vmem %s1109_s0, %s851_s20 }
  0x11   : > { %v938_v0 = vld [vmem:[%s1050_s19 + $0x40] sm:$0xff]   ;;  %v942_v4 = vld [vmem:[%s1050_s19 + $0x48] sm:$0xff]   ;;  %v946_v8 = vld [vmem:[%s1050_s19 + $0x50] sm:$0xff]   ;;  %s236_s26 = scalar_lea.vmem %s1111_s2, %s1118_s12  ;;  %s853_s27 = sshll.u32 %s1118_s12, 4 }
  0x12   : > { %v939_v1 = vld [vmem:[%s1050_s19 + $0xc0] sm:$0xff]   ;;  %858 = vmatprep.subr.bf16.mxu0 %v938_v0  ;;  %v943_v5 = vld [vmem:[%s1050_s19 + $0xc8] sm:$0xff]   ;;  %v947_v9 = vld [vmem:[%s1050_s19 + $0xd0] sm:$0xff]   ;;  %s245_s30 = scalar_lea.vmem %s1112_s3, %s853_s27 }
  0x13   : > { %v940_v2 = vld [vmem:[%s1050_s19] sm:$0xff]   ;;  %886 = vmatprep.subr.bf16.mxu1 %v939_v1  ;;  %v944_v6 = vld [vmem:[%s1050_s19 + $0x8] sm:$0xff]   ;;  %v948_v10 = vld [vmem:[%s1050_s19 + $0x10] sm:$0xff]  }
  0x14   : > { %v941_v3 = vld [vmem:[%s1050_s19 + $0x80] sm:$0xff]   ;;  %859 = vmatpush3.bf16.msra.mxu0 %v940_v2  ;;  %v945_v7 = vld [vmem:[%s1050_s19 + $0x88] sm:$0xff]   ;;  %v949_v11 = vld [vmem:[%s1050_s19 + $0x90] sm:$0xff]  }
  0x15   : > { %887 = vmatpush3.bf16.msra.mxu1 %v941_v3  ;;  %860 = vmatprep.subr.bf16.mxu0 %v942_v4  ;;  %v950_v12 = vld [vmem:[%s1050_s19 + $0x58] sm:$0xff]   ;;  %v954_v16 = vld [vmem:[%s1050_s19 + $0x60] sm:$0xff]   ;;  %v958_v20 = vld [vmem:[%s1050_s19 + $0x68] sm:$0xff]  }
  0x16   : > { %888 = vmatprep.subr.bf16.mxu1 %v943_v5  ;;  %v951_v13 = vld [vmem:[%s1050_s19 + $0xd8] sm:$0xff]   ;;  %v955_v17 = vld [vmem:[%s1050_s19 + $0xe0] sm:$0xff]   ;;  %v959_v21 = vld [vmem:[%s1050_s19 + $0xe8] sm:$0xff]  }
  0x17   : > { %v952_v14 = vld [vmem:[%s1050_s19 + $0x18] sm:$0xff]   ;;  %v956_v18 = vld [vmem:[%s1050_s19 + $0x20] sm:$0xff]   ;;  %v960_v22 = vld [vmem:[%s1050_s19 + $0x28] sm:$0xff]  }
  0x18   : > { %861 = vmatpush3.bf16.msra.mxu0 %v944_v6  ;;  %v953_v15 = vld [vmem:[%s1050_s19 + $0x98] sm:$0xff]   ;;  %v957_v19 = vld [vmem:[%s1050_s19 + $0xa0] sm:$0xff]   ;;  %v961_v23 = vld [vmem:[%s1050_s19 + $0xa8] sm:$0xff]  }
  0x19   : > { %889 = vmatpush3.bf16.msra.mxu1 %v945_v7  ;;  %862 = vmatprep.subr.bf16.mxu0 %v946_v8  ;;  %v962_v24 = vld [vmem:[%s1050_s19 + $0x70] sm:$0xff]   ;;  %v966_v28 = vld [vmem:[%s1050_s19 + $0x78] sm:$0xff]   ;;  %v804_v42 = vld [vmem:[%s236_s26] ss:$0 sm:$0xff] }
  0x1a   : > { %890 = vmatprep.subr.bf16.mxu1 %v947_v9  ;;  %v963_v25 = vld [vmem:[%s1050_s19 + $0xf0] sm:$0xff]   ;;  %v967_v29 = vld [vmem:[%s1050_s19 + $0xf8] sm:$0xff]  }
  0x1b   : > { %v964_v26 = vld [vmem:[%s1050_s19 + $0x30] sm:$0xff]   ;;  %v968_v30 = vld [vmem:[%s1050_s19 + $0x38] sm:$0xff]  }
  0x1c   : > { %863 = vmatpush3.bf16.msra.mxu0 %v948_v10  ;;  %v965_v27 = vld [vmem:[%s1050_s19 + $0xb0] sm:$0xff]   ;;  %v969_v31 = vld [vmem:[%s1050_s19 + $0xb8] sm:$0xff]  }
  0x1d   : > { %891 = vmatpush3.bf16.msra.mxu1 %v949_v11  ;;  %864 = vmatprep.subr.bf16.mxu0 %v950_v12  ;;  %v970_v32 = vld [vmem:[%s227_s23] ss:$16 sps:$4 sm:$0xff]   ;;  %v972_v33 = vld [vmem:[%s227_s23 + $0x4] ss:$16 sps:$4 sm:$0xff]   ;;  %v973_v34 = vld [vmem:[%s227_s23 + $0x8] ss:$16 sps:$4 sm:$0xff]  }
  0x1e   : > { %892 = vmatprep.subr.bf16.mxu1 %v951_v13  ;;  %v975_v35 = vld [vmem:[%s227_s23 + $0xc] ss:$16 sps:$4 sm:$0xff]   ;;  %591 = vmatprep.mubr.bf16.mxu0 %v972_v33  ;;  %v976_v36 = vld [vmem:[%s227_s23 + $0x24] ss:$16 sps:$4 sm:$0xff]   ;;  %v980_v38 = vld [vmem:[%s227_s23 + $0x20] ss:$16 sps:$4 sm:$0xff]  }
  0x1f   : > { %640 = vmatprep.mubr.bf16.mxu1 %v975_v35  ;;  %v978_v37 = vld [vmem:[%s227_s23 + $0x2c] ss:$16 sps:$4 sm:$0xff]   ;;  %v981_v39 = vld [vmem:[%s227_s23 + $0x28] ss:$16 sps:$4 sm:$0xff]  }
  0x20   : > { %865 = vmatpush3.bf16.msra.mxu0 %v952_v14 }
  0x21   : > { %893 = vmatpush3.bf16.msra.mxu1 %v953_v15  ;;  %866 = vmatprep.subr.bf16.mxu0 %v954_v16 }
  0x22   : > { %894 = vmatprep.subr.bf16.mxu1 %v955_v17 }
  0x24   : > { %867 = vmatpush3.bf16.msra.mxu0 %v956_v18 }
  0x25   : > { %895 = vmatpush3.bf16.msra.mxu1 %v957_v19  ;;  %868 = vmatprep.subr.bf16.mxu0 %v958_v20 }
  0x26   : > { %896 = vmatprep.subr.bf16.mxu1 %v959_v21 }
  0x28   : > { %869 = vmatpush3.bf16.msra.mxu0 %v960_v22 }
  0x29   : > { %897 = vmatpush3.bf16.msra.mxu1 %v961_v23  ;;  %870 = vmatprep.subr.bf16.mxu0 %v962_v24 }
  0x2a   : > { %898 = vmatprep.subr.bf16.mxu1 %v963_v25 }
  0x2c   : > { %871 = vmatpush3.bf16.msra.mxu0 %v964_v26 }
  0x2d   : > { %899 = vmatpush3.bf16.msra.mxu1 %v965_v27  ;;  %872 = vmatprep.subr.bf16.mxu0 %v966_v28 }
  0x2e   : > { %900 = vmatprep.subr.bf16.mxu1 %v967_v29 }
  0x30   : > { %873 = vmatpush3.bf16.msra.mxu0 %v968_v30 }
  0x31   : > { %901 = vmatpush3.bf16.msra.mxu1 %v969_v31 }
  0x33   : > { %592 = vmatmul.mubr.bf16.vlgmr.msra.gmra.mrb[0].mxu0 %v970_v32 }
  0x34   : > { %641 = vmatmul.mubr.bf16.vlgmr.msra.gmra.mrb[0].mxu1 %v973_v34  ;;  %599 = vmatprep.mubr.bf16.mxu0 %v976_v36 }
  0x35   : > { %648 = vmatprep.mubr.bf16.mxu1 %v978_v37 }
  0x3b   : > { %600 = vmatmul.mubr.bf16.gmra.mrb[4].mxu0 %v980_v38 }
  0x3c   : > { %649 = vmatmul.mubr.bf16.gmra.mrb[4].mxu1 %v981_v39 }
 0x106   : > { %v874_v40 = vpop.f32.mrb[0].mxu0 }
 0x107   : > { %v902_v41 = vpop.f32.mrb[0].mxu1  ;;  %v875_v43 = vpop.f32.mrb[1].mxu0 }
 0x108   : > { %v876_v44 = vadd.f32 %v875_v43, %v874_v40  ;;  %v903_v45 = vpop.f32.mrb[1].mxu1  ;;  %v877_v46 = vpop.f32.mrb[2].mxu0 }
 0x109   : > { %v904_v47 = vadd.f32 %v903_v45, %v902_v41  ;;  %v905_v48 = vpop.f32.mrb[2].mxu1  ;;  %v878_v49 = vpop.f32.mrb[3].mxu0 }
 0x10a   : > { %v594_v50 = vadd.f32 %v876_v44, %v804_v42  ;;  %v879_v51 = vadd.f32 %v878_v49, %v877_v46  ;;  %v906_v52 = vpop.f32.mrb[3].mxu1 }
 0x10b   : > { %v907_v53 = vadd.f32 %v906_v52, %v905_v48 }
 0x10c   : > { %v643_v54 = vadd.f32 %v904_v47, %v594_v50  ;;  %v597_v55 = vadd.f32 %v879_v51, %v804_v42 }
 0x10e   : > { %v657_v56 = vmax.f32 %v643_v54, 0.0  ;;  %v646_v57 = vadd.f32 %v907_v53, %v597_v55  ;;  %v880_v58 = vpop.f32.mrb[4].mxu0 }
 0x10f   : > { %v908_v59 = vpop.f32.mrb[4].mxu1  ;;  %v881_v60 = vpop.f32.mrb[5].mxu0 }
 0x110   : > { %v854_v61 = vpack.c.bf16 %v657_v56, %v657_v56  ;;  %v658_v62 = vmax.f32 %v646_v57, 0.0  ;;  %v882_v63 = vadd.f32 %v881_v60, %v880_v58  ;;  %v909_v0 = vpop.f32.mrb[5].mxu1  ;;  %v883_v1 = vpop.f32.mrb[6].mxu0 }
 0x111   : > { %v910_v2 = vadd.f32 %v909_v0, %v908_v59  ;;  %v911_v3 = vpop.f32.mrb[6].mxu1  ;;  %v884_v4 = vpop.f32.mrb[7].mxu0 }
 0x112   : > { %678 = vst.msk [vmem:[%s245_s30] sm:$0xf] %vm677_vm0, %v854_v61  ;;  %v855_v5 = vpack.c.bf16 %v658_v62, %v658_v62  ;;  %v602_v6 = vadd.f32 %v882_v63, %v804_v42  ;;  %v885_v7 = vadd.f32 %v884_v4, %v883_v1  ;;  %v912_v8 = vpop.f32.mrb[7].mxu1 }
 0x113   : > { %v913_v9 = vadd.f32 %v912_v8, %v911_v3 }
 0x114   : > { %679 = vst.msk [vmem:[%s245_s30 + $0x4] sm:$0xf] %vm677_vm0, %v855_v5  ;;  %v651_v10 = vadd.f32 %v910_v2, %v602_v6  ;;  %v605_v11 = vadd.f32 %v885_v7, %v804_v42 }
 0x116   : > { %v659_v12 = vmax.f32 %v651_v10, 0.0  ;;  %v654_v13 = vadd.f32 %v913_v9, %v605_v11 }
 0x118   : > { %v856_v14 = vpack.c.bf16 %v659_v12, %v659_v12  ;;  %v660_v15 = vmax.f32 %v654_v13, 0.0 }
 0x11a   : > { %680 = vst.msk [vmem:[%s245_s30 + $0x8] sm:$0xf] %vm677_vm0, %v856_v14  ;;  %v857_v16 = vpack.c.bf16 %v660_v15, %v660_v15 }
 0x11c   : > { %681 = vst.msk [vmem:[%s245_s30 + $0xc] sm:$0xf] %vm677_vm0, %v857_v16 }
 0x11d PF: > { %s13_s14 = sadd.s32 1, %s1004_s14   ;;  %s1113_s12 = smov %s1000_s13 }
 0x11e   : > { %p10_p5 = scmp.ge.s32.totalorder %s13_s14, 5   ;;  %s1114_s13 = smov %s1116_s15 }
 0x120   :  { %12 = sbr.rel (!%p10_p5) target bundleno = 2 (0x2), region = 68 }

// kernel: nhead_critic_forward.5
= control target key start
LH: loop header
LB: loop body
LE: loop exit
PB: predicated region body
PF: predicated region fallthrough
CT: control target
= control target key end

     0   :  { %12 = vsyncpa [#allocation3], 0  ;;  %s2208_s0 = inlined_call_operand.vmem [shape: bf16[3,2,576], index: 0, kind: input, shape index: {}]   ;;  %s2209_s1 = inlined_call_operand.vmem [shape: bf16[3,576,64], index: 1, kind: input, shape index: {}]   ;;  %s2210_s2 = inlined_call_operand.vmem [shape: f32[3,1,64], index: 2, kind: input, shape index: {}]   ;;  %s2211_s3 = inlined_call_operand.vmem [shape: bf16[3,64,512], index: 3, kind: input, shape index: {}]   ;;  %s2212_s4 = inlined_call_operand.vmem [shape: f32[3,1,512], index: 4, kind: input, shape index: {}]   ;;  %s2213_s5 = inlined_call_operand.vmem [shape: bf16[3,512,6], index: 5, kind: input, shape index: {}]   ;;  %s2214_s6 = inlined_call_operand.vmem [shape: f32[3,1,6], index: 6, kind: input, shape index: {}]   ;;  %s2215_s7 = inlined_call_operand.hbm [shape: f32[3,2,6], index: 7, kind: output, shape index: {}]  }
   0x1   :  { %14 = vsyncpa [#allocation3 + $0x1], 0  ;;  %s1999_s24 = smov 0   ;;  %s2001_s25 = smov 0  }
   0x2   :  { %s2003_s26 = smov 0   ;;  %s2005_s27 = smov 0  }
   0x3 LB: > { %s2020_s28 = sadd.s32 4294967295, %s1952_s27   ;;  %s1541_s29 = sadd.s32 4294967294, %s1952_s27   ;;  %s1952_s27 = sphi %s2005_s27, %s2221_s27   ;;  %s1948_s26 = sphi %s2003_s26, %s2220_s26   ;;  %s1944_s25 = sphi %s2001_s25, %s2219_s25   ;;  %s1940_s24 = sphi %s1999_s24, %s2218_s24  }
   0x4   : > { %s2024_s30 = sadd.s32 1, %s1952_s27   ;;  %s209_s8 = sadd.s32 1, %s1948_s26 }
   0x5   : > { %s206_s9 = ssub.s32 %s1952_s27, %s2024_s30  ;;  %p219_p0 = scmp.ne.s32.totalorder %s1948_s26, %s1944_s25 }
   0x6   : > { %p207_p1 = scmp.eq.s32.totalorder %s206_s9, 0  ;;  %p220_p2 = scmp.eq.s32.totalorder %s2020_s28, 2 }
   0x7   : > { %p225_p3 = scmp.ne.s32.totalorder %s1944_s25, %s1940_s24  ;;  %p226_p4 = scmp.eq.s32.totalorder %s1541_s29, 2 }
   0x8   : > { %s2035_s10 = scalar_select %p207_p1, %s1948_s26, %s209_s8  }
   0x9   : > { %p2037_p5 = por %p220_p2, %p219_p0  ;;  %p2041_p6 = por %p226_p4, %p225_p3 }
   0xa   : > { %p1544_p7 = scmp.ge.s32.totalorder %s1952_s27, 1  ;;  %p294_p8 = scmp.lt.s32.totalorder %s1952_s27, 4 }
   0xc   : > { %p295_p9 = pnand %p1544_p7, %p294_p8 }
   0xd   : > { %p350_p10 = scmp.lt.s32.totalorder (!%p295_p9), %s2020_s28, 2  ;;  %v465_v20 = vlaneseq (!%p295_p9)  ;;  %v1954_v22 = vmov (!%p295_p9), 1966171168   ;;  %v1955_v40 = vmov (!%p295_p9), 0.0   ;;  %vm1956_vm0 = vmmov (!%p295_p9), 0   ;;  %s347_s29 = sand.u32 (!%p295_p9), 1, %s1944_s25  }
   0xe   : > { %298 = sbr.rel (%p295_p9) target bundleno = 746 (0x2ea), region = 48  ;;  %v463_v23 = vunpack.c.l.s4 (!%p295_p9), %v1954_v22  ;;  %vm720_vm1 = vcmask (!%p295_p9), 523264   ;;  %vm1400_vm2 = vcmask (!%p295_p9), 41984  }
   0xf   : > { %v2081_v27 = vshrl.u32 (!%p295_p9), %v465_v20, 7 }
  0x10   : > { %v464_v29 = vunpack.c.0.s8 (!%p295_p9), %v463_v23 }
  0x12   : > { %v467_v34 = vsub.s32 (!%p295_p9), %v464_v29, %v2081_v27 }
  0x15   : > { %s2049_s13 = scalar_select %p350_p10, %s2020_s28, 2 }
  0x17   : > { %s1753_s14 = smul.u32 288, %s2049_s13  ;;  %s1645_s22 = sshll.u32 %s2049_s13, 7 }
  0x18   : > { %s1752_s18 = smul.u32 5, %s2049_s13  ;;  %s366_s8 = scalar_lea.vmem %s2211_s3, %s1645_s22 }
  0x19   : > { %s2055_s17 = scalar_lea.vmem %s2209_s1, %s1753_s14  ;;  %v1834_v53 = vld [vmem:[%s366_s8] ss:$16 sps:$4 sm:$0xff]   ;;  %v1836_v54 = vld [vmem:[%s366_s8 + $0x4] ss:$16 sps:$4 sm:$0xff]   ;;  %v1837_v55 = vld [vmem:[%s366_s8 + $0x8] ss:$16 sps:$4 sm:$0xff]   ;;  %s361_s19 = scalar_lea.vmem %s2210_s2, %s2049_s13 }
  0x1a   : > { %v1797_v0 = vld [vmem:[%s2055_s17 + $0x40] sm:$0xff]   ;;  %v1801_v4 = vld [vmem:[%s2055_s17 + $0x48] sm:$0xff]   ;;  %v1805_v8 = vld [vmem:[%s2055_s17 + $0x50] sm:$0xff]   ;;  %s353_s21 = scalar_lea.vmem %s2208_s0, %s1752_s18  ;;  %s1646_s9 = sshll.u32 %s2049_s13, 8 }
  0x1b   : > { %v1798_v1 = vld [vmem:[%s2055_s17] sm:$0xff]   ;;  %1647 = vmatprep.subr.bf16.mxu0 %v1797_v0  ;;  %v1802_v5 = vld [vmem:[%s2055_s17 + $0x8] sm:$0xff]   ;;  %v1806_v9 = vld [vmem:[%s2055_s17 + $0x10] sm:$0xff]   ;;  %s2109_s16 = scalar_lea.vmem %s2213_s5, %s1646_s9  ;;  %s1549_s20 = sshll.u32 %s2049_s13, 2 }
  0x1c   : > { %v1799_v2 = vld [vmem:[%s2055_s17 + $0xc0] sm:$0xff]   ;;  %1648 = vmatpush3.bf16.msra.mxu0 %v1798_v1  ;;  %v1803_v6 = vld [vmem:[%s2055_s17 + $0xc8] sm:$0xff]   ;;  %v1807_v10 = vld [vmem:[%s2055_s17 + $0xd0] sm:$0xff]   ;;  %s370_s23 = scalar_lea.vmem %s2212_s4, %s1549_s20  ;;  %s378_s15 = scalar_lea.vmem %s2214_s6, %s2049_s13 }
  0x1d   : > { %v1800_v3 = vld [vmem:[%s2055_s17 + $0x80] sm:$0xff]   ;;  %1669 = vmatprep.subr.bf16.mxu1 %v1799_v2  ;;  %1649 = vmatprep.subr.bf16.mxu0 %v1801_v4  ;;  %v1804_v7 = vld [vmem:[%s2055_s17 + $0x88] sm:$0xff]   ;;  %v1808_v11 = vld [vmem:[%s2055_s17 + $0x90] sm:$0xff]  }
  0x1e   : > { %1670 = vmatpush3.bf16.msra.mxu1 %v1800_v3  ;;  %v1809_v12 = vld [vmem:[%s2055_s17 + $0x58] sm:$0xff]   ;;  %v1813_v16 = vld [vmem:[%s2055_s17 + $0x60] sm:$0xff]   ;;  %v1817_v21 = vld [vmem:[%s2055_s17 + $0x68] sm:$0xff]  }
  0x1f   : > { %1671 = vmatprep.subr.bf16.mxu1 %v1803_v6  ;;  %v1810_v13 = vld [vmem:[%s2055_s17 + $0x18] sm:$0xff]   ;;  %v1814_v17 = vld [vmem:[%s2055_s17 + $0x20] sm:$0xff]   ;;  %v1818_v24 = vld [vmem:[%s2055_s17 + $0x28] sm:$0xff]  }
  0x20   : > { %1650 = vmatpush3.bf16.msra.mxu0 %v1802_v5  ;;  %v1811_v14 = vld [vmem:[%s2055_s17 + $0xd8] sm:$0xff]   ;;  %v1815_v18 = vld [vmem:[%s2055_s17 + $0xe0] sm:$0xff]   ;;  %v1819_v25 = vld [vmem:[%s2055_s17 + $0xe8] sm:$0xff]   ;;  %v1957_v5 = vmov 0  }
  0x21   : > { %1651 = vmatprep.subr.bf16.mxu0 %v1805_v8  ;;  %v1812_v15 = vld [vmem:[%s2055_s17 + $0x98] sm:$0xff]   ;;  %v1816_v19 = vld [vmem:[%s2055_s17 + $0xa0] sm:$0xff]   ;;  %v1820_v26 = vld [vmem:[%s2055_s17 + $0xa8] sm:$0xff]  }
  0x22   : > { %1672 = vmatpush3.bf16.msra.mxu1 %v1804_v7  ;;  %v1821_v28 = vld [vmem:[%s2055_s17 + $0x70] sm:$0xff]   ;;  %v1825_v33 = vld [vmem:[%s2055_s17 + $0x78] sm:$0xff]   ;;  %v380_v37 = vld [vmem:[%s353_s21] sm:$0x1f]  ;;  %s1403_s21 = scalar_lea.sflag [#allocation3], %s347_s29 }
  0x23   : > { %1673 = vmatprep.subr.bf16.mxu1 %v1807_v10  ;;  %v1822_v30 = vld [vmem:[%s2055_s17 + $0x30] sm:$0xff]   ;;  %v1826_v35 = vld [vmem:[%s2055_s17 + $0x38] sm:$0xff]   ;;  %v468_v38 = vrot.slane %v380_v37, %v467_v34  ;;  %v1830_v44 = vld [vmem:[%s2055_s17 + $0x100] sm:$0xff]   ;;  %v461_v48 = vcombine.high %v380_v37, %v380_v37 }
  0x24   : > { %1652 = vmatpush3.bf16.msra.mxu0 %v1806_v9  ;;  %v1823_v31 = vld [vmem:[%s2055_s17 + $0xf0] sm:$0xff]   ;;  %v1827_v36 = vld [vmem:[%s2055_s17 + $0xf8] sm:$0xff]   ;;  %v1831_v47 = vld [vmem:[%s2055_s17 + $0x108] sm:$0xff]  }
  0x25   : > { %1653 = vmatprep.subr.bf16.mxu0 %v1809_v12  ;;  %v1824_v32 = vld [vmem:[%s2055_s17 + $0xb0] sm:$0xff]   ;;  %v1829_v39 = vld [vmem:[%s2055_s17 + $0xb8] sm:$0xff]   ;;  %v476_v41 = vcombine.high %v468_v38, %v468_v38  ;;  %v483_v42 = vrot.slane %v468_v38, %v467_v34  ;;  %v475_v50 = vrot.slane %v461_v48, %v467_v34  ;;  %v1858_v6 = vld [vmem:[%s2109_s16 + $0x40] sm:$0xff]  }
  0x26   : > { %1674 = vmatpush3.bf16.msra.mxu1 %v1808_v11  ;;  %v1832_v49 = vld [vmem:[%s2055_s17 + $0x110] sm:$0xff]   ;;  %v1833_v51 = vld [vmem:[%s2055_s17 + $0x118] sm:$0xff]   ;;  %v1859_v7 = vld [vmem:[%s2109_s16 + $0xc0] sm:$0xff]  }
  0x27   : > { %1675 = vmatprep.subr.bf16.mxu1 %v1811_v14  ;;  %v497_v43 = vrot.slane %v476_v41, %v467_v34  ;;  %v498_v45 = vcombine.high %v483_v42, %v483_v42  ;;  %v490_v52 = vrot.slane %v475_v50, %v467_v34  ;;  %v1839_v56 = vld [vmem:[%s366_s8 + $0xc] ss:$16 sps:$4 sm:$0xff]   ;;  %v1840_v57 = vld [vmem:[%s366_s8 + $0x20] ss:$16 sps:$4 sm:$0xff]   ;;  %v1842_v58 = vld [vmem:[%s366_s8 + $0x24] ss:$16 sps:$4 sm:$0xff]  }
  0x28   : > { %1654 = vmatpush3.bf16.msra.mxu0 %v1810_v13  ;;  %v1843_v59 = vld [vmem:[%s366_s8 + $0x28] ss:$16 sps:$4 sm:$0xff]   ;;  %v1845_v60 = vld [vmem:[%s366_s8 + $0x2c] ss:$16 sps:$4 sm:$0xff]   ;;  %v1848_v61 = vld [vmem:[%s366_s8 + $0x44] ss:$16 sps:$4 sm:$0xff]  }
  0x29   : > { %1655 = vmatprep.subr.bf16.mxu0 %v1813_v16  ;;  %756 = vmatprep.mubr.bf16.mxu0 %v497_v43  ;;  %v499_v46 = vcombine.high %v497_v43, %v497_v43  ;;  %v1846_v62 = vld [vmem:[%s366_s8 + $0x40] ss:$16 sps:$4 sm:$0xff]   ;;  %v1851_v63 = vld [vmem:[%s366_s8 + $0x4c] ss:$16 sps:$4 sm:$0xff]   ;;  %v1849_v0 = vld [vmem:[%s366_s8 + $0x48] ss:$16 sps:$4 sm:$0xff]  }
  0x2a   : > { %1676 = vmatpush3.bf16.msra.mxu1 %v1812_v15  ;;  %v1854_v1 = vld [vmem:[%s366_s8 + $0x64] ss:$16 sps:$4 sm:$0xff]   ;;  %v1857_v2 = vld [vmem:[%s366_s8 + $0x6c] ss:$16 sps:$4 sm:$0xff]   ;;  %v1852_v3 = vld [vmem:[%s366_s8 + $0x60] ss:$16 sps:$4 sm:$0xff]  }
  0x2b   : > { %1677 = vmatprep.subr.bf16.mxu1 %v1815_v18  ;;  %796 = vmatprep.mubr.bf16.mxu1 %v499_v46  ;;  %v1855_v4 = vld [vmem:[%s366_s8 + $0x68] ss:$16 sps:$4 sm:$0xff]   ;;  %v1552_v9 = vld [vmem:[%s361_s19] ss:$0 sm:$0xff]  ;;  %v1868_v37 = vld [vmem:[%s2109_s16 + $0x10] sm:$0xff]   ;;  %s1545_s8 = sshll.u32 %s347_s29, 1 }
  0x2c   : > { %1656 = vmatpush3.bf16.msra.mxu0 %v1814_v17  ;;  %v1861_v29 = vld [vmem:[%s2109_s16 + $0x80] sm:$0xff]   ;;  %v1865_v34 = vld [vmem:[%s2109_s16 + $0x88] sm:$0xff]   ;;  %v1869_v38 = vld [vmem:[%s2109_s16 + $0x90] sm:$0xff]   ;;  %s349_s17 = scalar_lea.vmem [#allocation2], %s1545_s8 }
  0x2d   : > { %1657 = vmatprep.subr.bf16.mxu0 %v1817_v21  ;;  %v1872_v41 = vld [vmem:[%s2109_s16 + $0x18] sm:$0xff]   ;;  %v1874_v43 = vld [vmem:[%s2109_s16 + $0x60] sm:$0xff]   ;;  %v1879_v48 = vld [vmem:[%s2109_s16 + $0xe8] sm:$0xff]   ;;  %s1416_s18 = sshll.u32 %s349_s17, 4  ;;  %s2168_s18 = int_to_ptr.vmem [resolvable:$true] %s1416_s18 }
  0x2e   : > { %1678 = vmatpush3.bf16.msra.mxu1 %v1816_v19  ;;  %v1877_v46 = vld [vmem:[%s2109_s16 + $0xa0] sm:$0xff]   ;;  %v1881_v50 = vld [vmem:[%s2109_s16 + $0xa8] sm:$0xff]   ;;  %s1890_s22 = scalar_lea.vmem %s2168_s18, 32 }
  0x2f   : > { %1679 = vmatprep.subr.bf16.mxu1 %v1819_v25  ;;  %p1891_p11 = scmp.ne.s32.totalorder %s2168_s18, %s1890_s22 }
  0x30   : > { %1658 = vmatpush3.bf16.msra.mxu0 %v1818_v24 }
  0x31   : > { %1659 = vmatprep.subr.bf16.mxu0 %v1821_v28  ;;  %v1860_v28 = vld [vmem:[%s2109_s16] sm:$0xff]   ;;  %p1892_p12 = pnand %p1891_p11, %p2037_p5 }
  0x32   : > { %1680 = vmatpush3.bf16.msra.mxu1 %v1820_v26 }
  0x33   : > { %1681 = vmatprep.subr.bf16.mxu1 %v1823_v31  ;;  %v1862_v31 = vld [vmem:[%s2109_s16 + $0x48] sm:$0xff]   ;;  %p1893_p13 = pneg %p1892_p12 }
  0x34   : > { %1660 = vmatpush3.bf16.msra.mxu0 %v1822_v30 }
  0x35   : > { %1661 = vmatprep.subr.bf16.mxu0 %v1825_v33  ;;  %v1864_v33 = vld [vmem:[%s2109_s16 + $0x8] sm:$0xff]  }
  0x36   : > { %1682 = vmatpush3.bf16.msra.mxu1 %v1824_v32  ;;  %v1863_v32 = vld [vmem:[%s2109_s16 + $0xc8] sm:$0xff]  }
  0x37   : > { %1683 = vmatprep.subr.bf16.mxu1 %v1827_v36  ;;  %v1867_v36 = vld [vmem:[%s2109_s16 + $0xd0] sm:$0xff]  }
  0x38   : > { %1662 = vmatpush3.bf16.msra.mxu0 %v1826_v35  ;;  %v1866_v35 = vld [vmem:[%s2109_s16 + $0x50] sm:$0xff]  }
  0x39   : > { %1740 = vmatprep.subr.bf16.mxu0 %v1955_v40 }
  0x3a   : > { %1684 = vmatpush3.bf16.msra.mxu1 %v1829_v39  ;;  %v1870_v39 = vld [vmem:[%s2109_s16 + $0x58] sm:$0xff]  }
  0x3b   : > { %757 = vmatmul.mubr.bf16.vlgmr.msra.gmra.mrb[0].mxu0 %v483_v42  ;;  %967 = vmatprep.subr.bf16.mxu1 %v1836_v54  ;;  %v1873_v42 = vld [vmem:[%s2109_s16 + $0x98] sm:$0xff]   ;;  %v1885_v54 = vld [vmem:[%s2109_s16 + $0xb0] sm:$0xff]  }
  0x3c   : > { %1741 = vmatpush3.bf16.msra.mxu0 %v1830_v44  ;;  %1748 = vmatprep.mubr.msk.bf16.mxu0 %vm1956_vm0, %v1955_v40  ;;  %v1875_v44 = vld [vmem:[%s2109_s16 + $0xe0] sm:$0xff]  }
  0x3d   : > { %797 = vmatmul.mubr.bf16.vlgmr.msra.gmra.mrb[0].mxu1 %v498_v45  ;;  %1742 = vmatprep.subr.bf16.mxu0 %v1955_v40  ;;  %v1876_v45 = vld [vmem:[%s2109_s16 + $0x20] sm:$0xff]  }
  0x3e   : > { %968 = vmatpush1.bf16.msra.mxu1 %v1834_v53  ;;  %999 = vmatprep.mubr.bf16.mxu1 %v1957_v5  ;;  %v1884_v53 = vld [vmem:[%s2109_s16 + $0x30] sm:$0xff]  }
  0x3f   : > { %969 = vmatprep.subr.bf16.mxu1 %v1842_v58  ;;  %v1889_v58 = vld [vmem:[%s2109_s16 + $0xb8] sm:$0xff]  }
  0x40   : > { %1743 = vmatpush3.bf16.msra.mxu0 %v1831_v47  ;;  %v1878_v47 = vld [vmem:[%s2109_s16 + $0x68] sm:$0xff]  }
  0x41   : > { %1744 = vmatprep.subr.bf16.mxu0 %v1955_v40 }
  0x42   : > { %970 = vmatpush1.bf16.msra.mxu1 %v1840_v57  ;;  %v1888_v57 = vld [vmem:[%s2109_s16 + $0x38] sm:$0xff]  }
  0x43   : > { %971 = vmatprep.subr.bf16.mxu1 %v1848_v61  ;;  %v862_v61 = vld [vmem:[%s370_s23] sm:$0xf] }
  0x44   : > { %1745 = vmatpush3.bf16.msra.mxu0 %v1832_v49  ;;  %v1880_v49 = vld [vmem:[%s2109_s16 + $0x28] sm:$0xff]  }
  0x45   : > { %1746 = vmatprep.subr.bf16.mxu0 %v1955_v40  ;;  %v1871_v40 = vld [vmem:[%s2109_s16 + $0xd8] sm:$0xff]  }
  0x46   : > { %972 = vmatpush1.bf16.msra.mxu1 %v1846_v62  ;;  %v870_v62 = vsub.s32 1, %v2081_v27 }
  0x47   : > { %973 = vmatprep.subr.bf16.mxu1 %v1854_v1 }
  0x48   : > { %1747 = vmatpush3.bf16.msra.mxu0 %v1833_v51  ;;  %v1882_v51 = vld [vmem:[%s2109_s16 + $0x70] sm:$0xff]  }
  0x49   : > { %1008 = vmatprep.subr.bf16.mxu0 %v1839_v56  ;;  %v1887_v56 = vld [vmem:[%s2109_s16 + $0xf8] sm:$0xff]  }
  0x4a   : > { %974 = vmatpush1.bf16.msra.mxu1 %v1852_v3 }
  0x4b   : > { %1749 = vmatmul.mubr.msk.bf16.vlgmr.msra.gmra.mrb[4].mxu0 %vm720_vm1, %v490_v52  ;;  %1696 = vmatprep.subr.bf16.mxu1 %v1858_v6  ;;  %v1883_v52 = vld [vmem:[%s2109_s16 + $0xf0] sm:$0xff]  }
  0x4c   : > { %1009 = vmatpush1.bf16.msra.mxu0 %v1837_v55  ;;  %1040 = vmatprep.mubr.bf16.mxu0 %v1957_v5  ;;  %v1886_v55 = vld [vmem:[%s2109_s16 + $0x78] sm:$0xff]   ;;  %s1642_s16 = sshll.u32 %s2020_s28, 5  ;;  %s1958_s28 = smov [#allocation2]  }
  0x4d   : > { %1010 = vmatprep.subr.bf16.mxu0 %v1845_v60  ;;  %v874_v60 = vsub.s32 2, %v2081_v27  ;;  %s2166_s20 = scalar_lea.hbm %s2215_s7, %s1642_s16  ;;  %s1894_s23 = sshll.u32 %s1958_s28, 4  ;;  %s1895_s23 = int_to_ptr.vmem [resolvable:$false] %s1894_s23 }
  0x4e   : > { %s1896_s8 = scalar_lea.vmem %s1895_s23, 64  ;;  %p1897_p0 = scmp.lt.s32.totalorder %s2168_s18, %s1895_s23 }
  0x4f   : > { %v875_v1 = vrot.slane %v862_v61, %v874_v60  ;;  %p1898_p1 = scmp.lt.s32.totalorder %s1896_s8, %s1890_s22 }
  0x50   : > { %1011 = vmatpush1.bf16.msra.mxu0 %v1843_v59  ;;  %v866_v59 = vsub.s32 0, %v2081_v27 }
  0x51   : > { %1012 = vmatprep.subr.bf16.mxu0 %v1851_v63  ;;  %v878_v63 = vsub.s32 3, %v2081_v27  ;;  %p1899_p2 = por %p1898_p1, %p1897_p0 }
  0x53   : > { %v879_v3 = vrot.slane %v862_v61, %v878_v63  ;;  %p1900_p3 = pnand %p1899_p2, %p1893_p13 }
  0x54   : > { %1013 = vmatpush1.bf16.msra.mxu0 %v1849_v0  ;;  %v867_v0 = vrot.slane %v862_v61, %v866_v59 }
  0x55   : > { %1014 = vmatprep.subr.bf16.mxu0 %v1857_v2  ;;  %v871_v2 = vrot.slane %v862_v61, %v870_v62 }
  0x58   : > { %1015 = vmatpush1.bf16.msra.mxu0 %v1855_v4 }
  0x59   : > { %1718 = vmatprep.subr.bf16.mxu0 %v1859_v7 }
 0x10e   : > { %v1663_v8 = vpop.f32.mrb[0].mxu0 }
 0x10f   : > { %v1664_v10 = vpop.f32.mrb[1].mxu0 }
 0x110   : > { %v1665_v11 = vadd.f32 %v1664_v10, %v1663_v8  ;;  %v1666_v12 = vpop.f32.mrb[2].mxu0  ;;  %v1685_v13 = vpop.f32.mrb[0].mxu1 }
 0x111   : > { %v1667_v14 = vpop.f32.mrb[3].mxu0  ;;  %v1686_v15 = vpop.f32.mrb[1].mxu1 }
 0x112   : > { %v759_v16 = vadd.f32 %v1665_v11, %v1552_v9  ;;  %v1687_v17 = vadd.f32 %v1686_v15, %v1685_v13  ;;  %v1688_v18 = vpop.f32.mrb[2].mxu1 }
 0x113   : > { %v1689_v19 = vpop.f32.mrb[3].mxu1 }
 0x114   : > { %v799_v20 = vadd.f32 %v1687_v17, %v759_v16 }
 0x11e   : > { %v838_v21 = vpop.f32.mrb[4].mxu0 }
 0x11f   : > { %v839_v22 = vadd.f32 %v838_v21, %v799_v20  ;;  %v1750_v23 = vpop.f32.mrb[5].mxu0 }
 0x120   : > { %v841_v24 = vpop.f32.mrb[6].mxu0 }
 0x121   : > { %v844_v25 = vmax.f32 %v839_v22, 0.0  ;;  %v1751_v26 = vpop.f32.mrb[7].mxu0 }
 0x123   : > { %v845_v30 = vpack.c.bf16 %v844_v25, %v844_v25  ;;  %v1608_v25 = vld [vmem:[%s378_s15] ss:$0 sm:$0xff] }
 0x125   : > { %1606 = vmatmul.mubr.msk.bf16.vlgmr.msra.gmra.mrb[4].mxu1 %vm720_vm1, %v845_v30  ;;  %1607 = vmatmul.mubr.msk.bf16.vlgmr.msra.gmra.mrb[8].mxu0 %vm720_vm1, %v845_v30 }
 0x126   : > { %1697 = vmatpush3.bf16.msra.mxu1 %v1860_v28  ;;  %1719 = vmatpush3.bf16.msra.mxu0 %v1861_v29 }
 0x127   : > { %1698 = vmatprep.subr.bf16.mxu1 %v1862_v31  ;;  %1720 = vmatprep.subr.bf16.mxu0 %v1863_v32 }
 0x12a   : > { %1699 = vmatpush3.bf16.msra.mxu1 %v1864_v33  ;;  %1721 = vmatpush3.bf16.msra.mxu0 %v1865_v34 }
 0x12b   : > { %1700 = vmatprep.subr.bf16.mxu1 %v1866_v35  ;;  %1722 = vmatprep.subr.bf16.mxu0 %v1867_v36 }
 0x12e   : > { %1701 = vmatpush3.bf16.msra.mxu1 %v1868_v37  ;;  %1723 = vmatpush3.bf16.msra.mxu0 %v1869_v38 }
 0x12f   : > { %1702 = vmatprep.subr.bf16.mxu1 %v1870_v39  ;;  %1724 = vmatprep.subr.bf16.mxu0 %v1871_v40 }
 0x132   : > { %1703 = vmatpush3.bf16.msra.mxu1 %v1872_v41  ;;  %1725 = vmatpush3.bf16.msra.mxu0 %v1873_v42 }
 0x133   : > { %1704 = vmatprep.subr.bf16.mxu1 %v1874_v43  ;;  %1726 = vmatprep.subr.bf16.mxu0 %v1875_v44 }
 0x136   : > { %1705 = vmatpush3.bf16.msra.mxu1 %v1876_v45  ;;  %1727 = vmatpush3.bf16.msra.mxu0 %v1877_v46 }
 0x137   : > { %1706 = vmatprep.subr.bf16.mxu1 %v1878_v47  ;;  %1728 = vmatprep.subr.bf16.mxu0 %v1879_v48 }
 0x13a   : > { %1707 = vmatpush3.bf16.msra.mxu1 %v1880_v49  ;;  %1729 = vmatpush3.bf16.msra.mxu0 %v1881_v50 }
 0x13b   : > { %1708 = vmatprep.subr.bf16.mxu1 %v1882_v51  ;;  %1730 = vmatprep.subr.bf16.mxu0 %v1883_v52 }
 0x13e   : > { %1709 = vmatpush3.bf16.msra.mxu1 %v1884_v53  ;;  %1731 = vmatpush3.bf16.msra.mxu0 %v1885_v54 }
 0x13f   : > { %1710 = vmatprep.subr.bf16.mxu1 %v1886_v55  ;;  %1732 = vmatprep.subr.bf16.mxu0 %v1887_v56 }
 0x142   : > { %1711 = vmatpush3.bf16.msra.mxu1 %v1888_v57  ;;  %1733 = vmatpush3.bf16.msra.mxu0 %v1889_v58 }
 0x1f8   : > { %v1001_v4 = vpop.f32.mrb[4].mxu1  ;;  %v1042_v5 = vpop.f32.mrb[8].mxu0 }
 0x1f9   : > { %v1002_v6 = vadd.f32 %v1001_v4, %v867_v0  ;;  %v1043_v7 = vadd.f32 %v1042_v5, %v875_v1  ;;  %v1003_v8 = vpop.f32.mrb[5].mxu1  ;;  %v1044_v9 = vpop.f32.mrb[9].mxu0 }
 0x1fa   : > { %v1004_v10 = vadd.f32 %v1003_v8, %v871_v2  ;;  %v1045_v11 = vadd.f32 %v1044_v9, %v879_v3  ;;  %v1005_v12 = vpop.f32.mrb[6].mxu1  ;;  %v1046_v13 = vpop.f32.mrb[10].mxu0 }
 0x1fb   : > { %v1049_v14 = vmax.f32 %v1002_v6, 0.0  ;;  %v1051_v15 = vmax.f32 %v1043_v7, 0.0  ;;  %v1006_v16 = vpop.f32.mrb[7].mxu1  ;;  %v1047_v27 = vpop.f32.mrb[11].mxu0 }
 0x1fc   : > { %v1050_v17 = vmax.f32 %v1004_v10, 0.0  ;;  %v1052_v18 = vmax.f32 %v1045_v11, 0.0 }
 0x1fd   : > { %v1053_v21 = vpack.c.bf16 %v1049_v14, %v1049_v14  ;;  %v1055_v22 = vpack.c.bf16 %v1051_v15, %v1051_v15 }
 0x1fe   : > { %v1054_v19 = vpack.c.bf16 %v1050_v17, %v1050_v17  ;;  %v1056_v20 = vpack.c.bf16 %v1052_v18, %v1052_v18 }
 0x200   : > { %1352 = vmatprep.mubr.bf16.mxu1 %v1054_v19  ;;  %1392 = vmatprep.mubr.bf16.mxu0 %v1056_v20 }
 0x201   : > { %1353 = vmatmul.mubr.bf16.vlgmr.msra.gmra.mrb[8].mxu1 %v1053_v21  ;;  %1393 = vmatmul.mubr.bf16.vlgmr.msra.gmra.mrb[12].mxu0 %v1055_v22 }
 0x2d4   : > { %v1712_v23 = vpop.f32.mrb[8].mxu1  ;;  %v1734_v24 = vpop.f32.mrb[12].mxu0 }
 0x2d5   : > { %v1713_v26 = vpop.f32.mrb[9].mxu1  ;;  %v1735_v28 = vpop.f32.mrb[13].mxu0 }
 0x2d6   : > { %v1714_v29 = vadd.f32 %v1713_v26, %v1712_v23  ;;  %v1736_v30 = vadd.f32 %v1735_v28, %v1734_v24  ;;  %v1715_v31 = vpop.f32.mrb[10].mxu1  ;;  %v1737_v32 = vpop.f32.mrb[14].mxu0 }
 0x2d7   : > { %v1716_v33 = vpop.f32.mrb[11].mxu1  ;;  %v1738_v34 = vpop.f32.mrb[15].mxu0 }
 0x2d8   : > { %v1355_v35 = vadd.f32 %v1714_v29, %v1608_v25 }
 0x2da   : > { %v1395_v36 = vadd.f32 %v1736_v30, %v1355_v35 }
 0x2dc   : > { %1401 = vst.msk [vmem:[%s349_s17] sm:$0x3] %vm1400_vm2, %v1395_v36 }
 0x2dd   : > { %1903 = shalt.err (!%p1900_p3)
}
 0x2de   : > { %s1904_s29 = scalar_lea.hbm %s2166_s20, 32  ;;  %s1908_s15 = scalar_lea.hbm %s2215_s7, 96 }
 0x2df   : > { %p1905_p4 = scmp.ne.s32.totalorder %s2166_s20, %s1904_s29  ;;  %p1909_p9 = scmp.lt.u32.totalorder %s2166_s20, %s2215_s7 }
 0x2e0   : > { %p1910_p10 = scmp.lt.u32.totalorder %s1908_s15, %s1904_s29  ;;  %p1912_p12 = scmp.lt.u32.totalorder %s1904_s29, %s2166_s20 }
 0x2e1   : > { %p1906_p7 = pnand %p1905_p4, %p2037_p5 }
 0x2e2   : > { %p1911_p11 = por %p1910_p10, %p1909_p9 }
 0x2e3   : > { %p1907_p8 = pneg %p1906_p7 }
 0x2e4   : > { %p1913_p13 = por %p1912_p12, %p1911_p11 }
 0x2e6   : > { %p1914_p0 = pnand %p1913_p13, %p1907_p8 }
 0x2e8   : > { %1917 = shalt.err (!%p1914_p0)
}
 0x2e9   : > { %1754 = dma.vmem_to_hbm [thread:$0]  (%p2037_p5), %s2168_s18, 32, %s2166_s20, %s1403_s21  }
 0x2ea PF: > { %p1760_p1 = scmp.ge.s32.totalorder %s1952_s27, 2  ;;  %s1428_s19 = sand.u32 1, %s1940_s24  }
 0x2eb   : > { %s1429_s13 = scalar_lea.sflag [#allocation3], %s1428_s19 }
 0x2ec   : > { %p1757_p2 = pnand %p1760_p1, %p2041_p6 }
 0x2ee   : > { %1935 = dma.done.wait (!%p1757_p2), %s1429_s13, 32  }
 0x2ef   : > { %1937 = vsyncadd (!%p1757_p2), %s1429_s13, 4294967264  ;;  %p17_p3 = scmp.ge.s32.totalorder %s2024_s30, 5   ;;  %s2218_s24 = smov %s1944_s25 }
 0x2f0   : > { %s2219_s25 = smov %s1948_s26  ;;  %s2220_s26 = smov %s2035_s10 }
 0x2f1   : > { %s2221_s27 = smov %s2024_s30  ;;  %19 = sbr.rel (!%p17_p3) target bundleno = 3 (0x3), region = 101 }
 0x2f8   :  { %1434 = vsyncpa [#allocation3], 1 }
 0x2f9   :  { %1436 = vsyncpa [#allocation3 + $0x1], 1 }

</bundles_post_ra>
